<compile_context>
chip_gen: v7x
topology: tpu7x:2x2x1
jax: 0.10.0
libtpu: 0.0.40
codegen_flags: <defaults>
</compile_context>

<pallas_src>
from typing import NamedTuple

import jax
import jax.numpy as jnp
from jax import lax
from jax.experimental import pallas as pl
from jax.experimental.pallas import tpu as pltpu


_CHUNK = 8          # modes per inner matmul batch (bounds k1/k2/k3 live ranges)
_LANE = 128         # lane width  -> channel padding target
_MAX_TILE_M = 32    # max modes per grid step
_MAX_TILE_B = 256   # max batch rows per grid step (matmul M dimension)


def _round_up(x, m):
    return -(-x // m) * m


def _pad_to(x, axis, size):
    pad = size - x.shape[axis]
    if pad <= 0:
        return x
    widths = [(0, 0)] * x.ndim
    widths[axis] = (0, pad)
    return jnp.pad(x, widths)


def _sublane_rows(dtype):
    # f32 -> 8, bf16 -> 16, (int8/fp8 -> 32): keep sublanes fully packed.
    return 8 * (4 // jnp.dtype(dtype).itemsize)


def _vmem_limit_bytes():
    # v5e/v6e have 128 MiB physical VMEM -> allow the bigger tiles; v7x has
    # only 64 MiB, keep generous headroom there.
    try:
        cap = pltpu.get_tpu_info().vmem_capacity_bytes
    except Exception:
        cap = 64 * 1024 * 1024
    return (96 if cap >= 100 * 1024 * 1024 else 48) * 1024 * 1024


def _choose_tiles(modes1, ci_pad, co_pad, itemsize):
    """Pick (tile_m, tile_co) so the weight block (x2 buffers) fits VMEM."""
    w_budget = 6 * 1024 * 1024                      # per weight block
    tile_co = co_pad
    if 3 * _CHUNK * ci_pad * tile_co * itemsize > w_budget:
        tile_co = _LANE                             # very wide channels: tile Co
    m_min = _round_up(modes1, _CHUNK)
    per_mode = 3 * ci_pad * tile_co * itemsize
    tile_m = max(_CHUNK,
                 min(_MAX_TILE_M, (w_budget // per_mode) // _CHUNK * _CHUNK))
    tile_m = min(tile_m, m_min)
    # v7x megacore: give the "parallel" mode axis >= 2 grid steps when there
    # is enough work to split.
    if m_min // tile_m < 2 and m_min >= 2 * _CHUNK:
        tile_m = max(_CHUNK, ((m_min // 2) // _CHUNK) * _CHUNK)
    return tile_m, tile_co


# -----------------------------------------------------------------------------
# Pallas kernel: per-mode complex channel mixing on the MXU.
# -----------------------------------------------------------------------------
def _spectral_mul_kernel(a_ref, w_ref, o_ref):
    """One (mode-tile, co-tile, batch-tile) block.

    a_ref : (2, tm, tb, Ci)   packed [real, imag] activations (mode-major)
    w_ref : (3, tm, Ci, tCo)  precomputed Karatsuba planes [wr, wi-wr, wr+wi]
    o_ref : (2, tm, tb, tCo)  packed [real, imag] output (f32)
    """
    n_chunks = a_ref.shape[1] // _CHUNK
    # Batched matmul: batch dim = mode, contract over Ci, M rows = batch tile.
    dn = (((2,), (1,)), ((0,), (0,)))

    def chunk(c, carry):
        s = pl.ds(pl.multiple_of(c * _CHUNK, _CHUNK), _CHUNK)
        ar = a_ref[0, s, :, :]          # (CHUNK, tb, Ci)
        ai = a_ref[1, s, :, :]
        w0 = w_ref[0, s, :, :]          # (CHUNK, Ci, tCo)   wr
        w1 = w_ref[1, s, :, :]          #                    wi - wr
        w2 = w_ref[2, s, :, :]          #                    wr + wi
        # Karatsuba / 3-mult complex product.  Only the small activation add
        # runs on the VPU; all weight-side combinations were hoisted to
        # parameter-prep time (and computed there in f32).
        k1 = lax.dot_general(ar + ai, w0, dn, preferred_element_type=jnp.float32)
        k2 = lax.dot_general(ar, w1, dn, preferred_element_type=jnp.float32)
        k3 = lax.dot_general(ai, w2, dn, preferred_element_type=jnp.float32)
        o_ref[0, s, :, :] = (k1 - k3).astype(o_ref.dtype)   # real part
        o_ref[1, s, :, :] = (k1 + k2).astype(o_ref.dtype)   # imag part
        return carry

    lax.fori_loop(0, n_chunks, chunk, 0, unroll=True)


def _spectral_mul(a_pk, w_pk, tile_m, tile_b, tile_co):
    """a_pk: (2, M_pad, B_pad, Ci_pad), w_pk: (3, M_pad, Ci_pad, Co_pad)."""
    _, m_pad, b_pad, ci_pad = a_pk.shape
    co_pad = w_pk.shape[3]
    grid = (m_pad // tile_m, co_pad // tile_co, b_pad // tile_b)

    return pl.pallas_call(
        _spectral_mul_kernel,
        out_shape=jax.ShapeDtypeStruct((2, m_pad, b_pad, co_pad), jnp.float32),
        grid_spec=pltpu.PrefetchScalarGridSpec(
            num_scalar_prefetch=0,
            grid=grid,
            in_specs=[
                # Activations: independent of the co axis.
                pl.BlockSpec((2, tile_m, tile_b, ci_pad),
                             lambda m, c, b: (0, m, b, 0)),
                # Weights: constant along the inner batch axis -> one DMA per
                # (mode, co) block, VMEM-resident across all batch tiles.
                pl.BlockSpec((3, tile_m, ci_pad, tile_co),
                             lambda m, c, b: (0, m, 0, c)),
            ],
            out_specs=pl.BlockSpec((2, tile_m, tile_b, tile_co),
                                   lambda m, c, b: (0, m, b, c)),
        ),
        compiler_params=pltpu.CompilerParams(
            dimension_semantics=("parallel", "parallel", "parallel"),
            vmem_limit_bytes=_vmem_limit_bytes(),
        ),
    )(a_pk, w_pk)


# -----------------------------------------------------------------------------
# Wrapper: weight prep (hoisted, weights are static) + FFT glue.
# -----------------------------------------------------------------------------
class SpectralWeights(NamedTuple):
    w_pk: jax.Array        # (3, M_pad, Ci_pad, Co_pad) Karatsuba planes
    modes1: int
    cin: int
    cout: int
    tile_m: int
    tile_co: int
    compute_dtype: jnp.dtype


def prepare_spectral_weights(w_real, w_imag, *, compute_dtype=jnp.bfloat16):
    """Precompute the packed Karatsuba weight planes (do this once; static)."""
    ci, co, modes1 = w_real.shape
    assert w_imag.shape == (ci, co, modes1)
    ci_pad = _round_up(ci, _LANE)
    co_pad = _round_up(co, _LANE)
    itemsize = jnp.dtype(compute_dtype).itemsize
    tile_m, tile_co = _choose_tiles(modes1, ci_pad, co_pad, itemsize)
    m_pad = _round_up(_round_up(modes1, _CHUNK), tile_m)

    wr = w_real.astype(jnp.float32)
    wi = w_imag.astype(jnp.float32)
    # Karatsuba planes in f32 BEFORE any low-precision cast (avoids extra bf16
    # rounding of the combinations); mode-major layout for the kernel.
    w_pk = jnp.stack([wr, wi - wr, wr + wi], axis=0)       # (3, Ci, Co, M)
    w_pk = jnp.transpose(w_pk, (0, 3, 1, 2))               # (3, M, Ci, Co)
    w_pk = _pad_to(_pad_to(_pad_to(w_pk, 3, co_pad), 2, ci_pad), 1, m_pad)
    w_pk = w_pk.astype(compute_dtype)
    return SpectralWeights(w_pk, modes1, ci, co, tile_m, tile_co, compute_dtype)


def spectral_conv1d(x, weights: SpectralWeights):
    """Forward pass of SpectralConv1d.

    x       : (B, Cin, N) float32
    weights : prepare_spectral_weights(...) output
    returns : (B, Cin(=Cout), N) float32
    """
    B, Cin, N = x.shape
    assert Cin == weights.cin
    assert weights.cin == weights.cout, \
        "reference module requires in_channels == out_channels"
    modes1 = weights.modes1
    n_freq = N // 2 + 1
    assert modes1 <= n_freq

    _, m_pad, ci_pad, co_pad = weights.w_pk.shape
    sub = _sublane_rows(weights.compute_dtype)
    tile_b = min(_round_up(B, sub), _MAX_TILE_B)
    b_pad = _round_up(B, tile_b)

    # ---- forward FFT (glue, plain JAX: no Pallas FFT primitive on TPU) ----
    x_ft = jnp.fft.rfft(x.astype(jnp.float32), axis=2)      # (B, Cin, n_freq) c64
    a_low = x_ft[:, :, :modes1]                              # (B, Cin, M)

    # Pack [real, imag] -> mode-major in a single transpose, then one fused
    # pad+cast pass (channels->lanes, batch->sublanes, modes->tile multiple).
    a_pk = jnp.stack([jnp.real(a_low), jnp.imag(a_low)], axis=0)   # (2, B, Ci, M)
    a_pk = jnp.transpose(a_pk, (0, 3, 1, 2))                       # (2, M, B, Ci)
    a_pk = jnp.pad(a_pk, ((0, 0), (0, m_pad - modes1), (0, b_pad - B),
                          (0, ci_pad - Cin))).astype(weights.compute_dtype)

    # ---- hot path: complex channel mixing on the MXU (Pallas kernel) ----
    out_pk = _spectral_mul(a_pk, weights.w_pk, weights.tile_m, tile_b,
                           weights.tile_co)                  # (2, Mp, Bp, Cop) f32

    out_r = out_pk[0, :modes1, :B, :weights.cout]            # (M, B, Co)
    out_i = out_pk[1, :modes1, :B, :weights.cout]
    out_low = jnp.transpose(out_r + 1j * out_i, (1, 2, 0))   # (B, Co, M) c64
    out_low = out_low.astype(jnp.complex64)

    # Zero-fill the dropped high modes via pad (no DUS over a zero buffer).
    out_ft = jnp.pad(out_low, ((0, 0), (0, 0), (0, n_freq - modes1)))

    # ---- inverse FFT (glue, plain JAX) ----
    y = jnp.fft.irfft(out_ft, n=N, axis=2)
    return y.astype(jnp.float32)


if __name__ == "__main__":
    # Small deterministic config consistent with the module's forward.
    B, Cin, Cout, N, modes1 = 2, 4, 4, 16, 5

    key = jax.random.PRNGKey(0)
    k_x, k_wr, k_wi = jax.random.split(key, 3)

    # Input: (batch, in_channels, spatial)
    x = jax.random.normal(k_x, (B, Cin, N), dtype=jnp.float32)

    # Parameters: scale * rand(...) with complex dtype -> real & imag ~ U[0,1).
    scale = 1.0 / (Cin * Cout)
    w_real = scale * jax.random.uniform(k_wr, (Cin, Cout, modes1), dtype=jnp.float32)
    w_imag = scale * jax.random.uniform(k_wi, (Cin, Cout, modes1), dtype=jnp.float32)

    # Pure-JAX reference for correctness.
    x_ft = jnp.fft.rfft(x, axis=2)
    w_c = (w_real + 1j * w_imag).astype(jnp.complex64)
    out_low = jnp.einsum("bix,iox->box", x_ft[:, :, :modes1], w_c)
    out_ft = jnp.zeros((B, Cin, N // 2 + 1), dtype=jnp.complex64)
    out_ft = out_ft.at[:, :, :modes1].set(out_low)
    y_ref = jnp.fft.irfft(out_ft, n=N, axis=2).astype(jnp.float32)

    # Default fast path: bf16 operands, f32 MXU accumulation.
    w_bf16 = prepare_spectral_weights(w_real, w_imag, compute_dtype=jnp.bfloat16)
    y_bf16 = jax.block_until_ready(spectral_conv1d(x, w_bf16))
    assert y_bf16.shape == (B, Cin, N)
    assert jnp.allclose(y_bf16, y_ref, atol=2e-2, rtol=2e-2), "bf16 mismatch"

    # Opt-in f32 debug path: tight tolerance.
    w_f32 = prepare_spectral_weights(w_real, w_imag, compute_dtype=jnp.float32)
    y_f32 = jax.block_until_ready(spectral_conv1d(x, w_f32))
    assert y_f32.shape == (B, Cin, N)
    assert jnp.allclose(y_f32, y_ref, atol=1e-4, rtol=1e-4), "f32 mismatch"

    print("KERNEL_OK")
</pallas_src>

<mosaic_0001>
module attributes {stable_mosaic.version = 11 : i64} {
  func.func @_spectral_mul_kernel(%arg0: i32, %arg1: i32, %arg2: i32, %arg3: memref<2x8x16x128xbf16, #tpu.memory_space<vmem>>, %arg4: memref<3x8x128x128xbf16, #tpu.memory_space<vmem>>, %arg5: memref<2x8x16x128xf32, #tpu.memory_space<vmem>>) attributes {dimension_semantics = [#tpu.dimension_semantics<parallel>, #tpu.dimension_semantics<parallel>, #tpu.dimension_semantics<parallel>], iteration_bounds = array<i64: 1, 1, 1>, scalar_prefetch = 0 : i64, scratch_operands = 0 : i64, tpu.core_type = #tpu.core_type<tc>, window_params = [{transform_indices = @transform_0, window_bounds = array<i64: 2, 8, 16, 128>}, {transform_indices = @transform_1, window_bounds = array<i64: 3, 8, 128, 128>}, {transform_indices = @transform_2, window_bounds = array<i64: 2, 8, 16, 128>}]} {
    %c0_i32 = arith.constant 0 : i32
    %c8_i32 = arith.constant 8 : i32
    %0 = arith.muli %c0_i32, %c8_i32 : i32
    %1 = tpu.assume_multiple %0, 8 : i32
    %c0 = arith.constant 0 : index
    %2 = arith.index_cast %1 : i32 to index
    %c0_0 = arith.constant 0 : index
    %c0_1 = arith.constant 0 : index
    %3 = vector.load %arg3[%c0, %2, %c0_0, %c0_1] : memref<2x8x16x128xbf16, #tpu.memory_space<vmem>>, vector<1x8x16x128xbf16>
    %4 = vector.shape_cast %3 : vector<1x8x16x128xbf16> to vector<8x16x128xbf16>
    %c1 = arith.constant 1 : index
    %5 = arith.index_cast %1 : i32 to index
    %c0_2 = arith.constant 0 : index
    %c0_3 = arith.constant 0 : index
    %6 = vector.load %arg3[%c1, %5, %c0_2, %c0_3] : memref<2x8x16x128xbf16, #tpu.memory_space<vmem>>, vector<1x8x16x128xbf16>
    %7 = vector.shape_cast %6 : vector<1x8x16x128xbf16> to vector<8x16x128xbf16>
    %c0_4 = arith.constant 0 : index
    %8 = arith.index_cast %1 : i32 to index
    %c0_5 = arith.constant 0 : index
    %c0_6 = arith.constant 0 : index
    %9 = vector.load %arg4[%c0_4, %8, %c0_5, %c0_6] : memref<3x8x128x128xbf16, #tpu.memory_space<vmem>>, vector<1x8x128x128xbf16>
    %10 = vector.shape_cast %9 : vector<1x8x128x128xbf16> to vector<8x128x128xbf16>
    %c1_7 = arith.constant 1 : index
    %11 = arith.index_cast %1 : i32 to index
    %c0_8 = arith.constant 0 : index
    %c0_9 = arith.constant 0 : index
    %12 = vector.load %arg4[%c1_7, %11, %c0_8, %c0_9] : memref<3x8x128x128xbf16, #tpu.memory_space<vmem>>, vector<1x8x128x128xbf16>
    %13 = vector.shape_cast %12 : vector<1x8x128x128xbf16> to vector<8x128x128xbf16>
    %c2 = arith.constant 2 : index
    %14 = arith.index_cast %1 : i32 to index
    %c0_10 = arith.constant 0 : index
    %c0_11 = arith.constant 0 : index
    %15 = vector.load %arg4[%c2, %14, %c0_10, %c0_11] : memref<3x8x128x128xbf16, #tpu.memory_space<vmem>>, vector<1x8x128x128xbf16>
    %16 = vector.shape_cast %15 : vector<1x8x128x128xbf16> to vector<8x128x128xbf16>
    %17 = arith.addf %4, %7 : vector<8x16x128xbf16>
    %cst = arith.constant dense<0.000000e+00> : vector<8x16x128xf32>
    %18 = tpu.matmul %17, %10, %cst {dimension_numbers = #tpu.dot_dimension_numbers<[2], [1], [1], [2], [0, 0, 0, 1, 1, 2], [0], [0]>} : vector<8x16x128xbf16>, vector<8x128x128xbf16>, vector<8x16x128xf32> -> vector<8x16x128xf32>
    %cst_12 = arith.constant dense<0.000000e+00> : vector<8x16x128xf32>
    %19 = tpu.matmul %4, %13, %cst_12 {dimension_numbers = #tpu.dot_dimension_numbers<[2], [1], [1], [2], [0, 0, 0, 1, 1, 2], [0], [0]>} : vector<8x16x128xbf16>, vector<8x128x128xbf16>, vector<8x16x128xf32> -> vector<8x16x128xf32>
    %cst_13 = arith.constant dense<0.000000e+00> : vector<8x16x128xf32>
    %20 = tpu.matmul %7, %16, %cst_13 {dimension_numbers = #tpu.dot_dimension_numbers<[2], [1], [1], [2], [0, 0, 0, 1, 1, 2], [0], [0]>} : vector<8x16x128xbf16>, vector<8x128x128xbf16>, vector<8x16x128xf32> -> vector<8x16x128xf32>
    %21 = arith.subf %18, %20 : vector<8x16x128xf32>
    %c0_14 = arith.constant 0 : index
    %22 = arith.index_cast %1 : i32 to index
    %c0_15 = arith.constant 0 : index
    %c0_16 = arith.constant 0 : index
    %23 = vector.load %arg5[%c0_14, %22, %c0_15, %c0_16] : memref<2x8x16x128xf32, #tpu.memory_space<vmem>>, vector<1x8x16x128xf32>
    %24 = vector.shape_cast %23 : vector<1x8x16x128xf32> to vector<8x16x128xf32>
    %25 = vector.shape_cast %21 : vector<8x16x128xf32> to vector<1x8x16x128xf32>
    tpu.vector_store %arg5[%c0_14, %22, %c0_15, %c0_16], %25 {strides = array<i32>} : memref<2x8x16x128xf32, #tpu.memory_space<vmem>>, vector<1x8x16x128xf32>,
    %26 = arith.addf %18, %19 : vector<8x16x128xf32>
    %c1_17 = arith.constant 1 : index
    %27 = arith.index_cast %1 : i32 to index
    %c0_18 = arith.constant 0 : index
    %c0_19 = arith.constant 0 : index
    %28 = vector.load %arg5[%c1_17, %27, %c0_18, %c0_19] : memref<2x8x16x128xf32, #tpu.memory_space<vmem>>, vector<1x8x16x128xf32>
    %29 = vector.shape_cast %28 : vector<1x8x16x128xf32> to vector<8x16x128xf32>
    %30 = vector.shape_cast %26 : vector<8x16x128xf32> to vector<1x8x16x128xf32>
    tpu.vector_store %arg5[%c1_17, %27, %c0_18, %c0_19], %30 {strides = array<i32>} : memref<2x8x16x128xf32, #tpu.memory_space<vmem>>, vector<1x8x16x128xf32>,
    %c1_i32 = arith.constant 1 : i32
    return
  }
  func.func @transform_0(%arg0: i32, %arg1: i32, %arg2: i32) -> (i32, i32, i32, i32) {
    %c0_i32 = arith.constant 0 : i32
    %c0_i32_0 = arith.constant 0 : i32
    %c0_i32_1 = arith.constant 0 : i32
    return %c0_i32, %arg0, %arg2, %c0_i32_0 : i32, i32, i32, i32
  }
  func.func @transform_1(%arg0: i32, %arg1: i32, %arg2: i32) -> (i32, i32, i32, i32) {
    %c0_i32 = arith.constant 0 : i32
    %c0_i32_0 = arith.constant 0 : i32
    %c0_i32_1 = arith.constant 0 : i32
    return %c0_i32, %arg0, %c0_i32_0, %arg1 : i32, i32, i32, i32
  }
  func.func @transform_2(%arg0: i32, %arg1: i32, %arg2: i32) -> (i32, i32, i32, i32) {
    %c0_i32 = arith.constant 0 : i32
    %c0_i32_0 = arith.constant 0 : i32
    return %c0_i32, %arg0, %arg2, %arg1 : i32, i32, i32, i32
  }
}

</mosaic_0001>

<bundles_post_ra>
// kernel: tpu_custom_call.1
= control target key start
LH: loop header
LB: loop body
LE: loop exit
PB: predicated region body
PF: predicated region fallthrough
CT: control target
= control target key end

     0   :  { %7 = vsyncpa [#allocation3], 0  ;;  %s4525_s0 = inlined_call_operand.hbm [shape: bf16[2,8,16,128], index: 0, kind: input, shape index: {}]   ;;  %s4526_s1 = inlined_call_operand.hbm [shape: bf16[3,8,128,128], index: 1, kind: input, shape index: {}]   ;;  %s4527_s2 = inlined_call_operand.hbm [shape: f32[2,8,16,128], index: 2, kind: output, shape index: {}]  }
   0x1   :  { %8 = vsyncpa [#allocation6], 0 }
   0x2   :  { %9 = vsyncpa [#allocation4], 0  ;;  %s4073_s9 = smov [#allocation2]   ;;  %s4001_s13 = scalar_lea.hbm %s4525_s0, 2048 }
   0x3   :  { %s15_s10 = sshll.u32 %s4073_s9, 4  ;;  %p4002_p0 = scmp.ne.s32.totalorder %s4525_s0, %s4001_s13  ;;  %s16_s10 = int_to_ptr.vmem [resolvable:$true] %s15_s10 }
   0x4   :  { %p4005_p1 = scmp.lt.u32.totalorder %s4001_s13, %s4525_s0 }
   0x6   :  { %p4007_p2 = pnand %p4005_p1, %p4002_p0 }
   0x8   :  { %4010 = shalt.err (!%p4007_p2)
}
   0x9   :  { %s4011_s18 = scalar_lea.vmem %s16_s10, 2048  ;;  %p4016_p4 = scmp.lt.s32.totalorder %s16_s10, %s16_s10 }
   0xa   :  { %p4012_p3 = scmp.ne.s32.totalorder %s16_s10, %s4011_s18  ;;  %p4017_p5 = scmp.lt.s32.totalorder %s4011_s18, %s4011_s18 }
   0xc   :  { %p4018_p6 = por %p4017_p5, %p4016_p4 }
   0xe   :  { %p4019_p7 = pnand %p4018_p6, %p4012_p3 }
  0x10   :  { %4022 = shalt.err (!%p4019_p7)
}
  0x11   :  { %s4074_s19 = smov 64   ;;  %s4075_s20 = smov 4  }
  0x12   :  { %21 = dma.hbm_to_vmem [thread:$0]  %s4525_s0, 2048, %s16_s10, [#allocation3], %s4074_s19, %s4074_s19, %s4075_s20  }
  0x13   :  { %s4076_s23 = smov [#allocation5]   ;;  %s4023_s27 = scalar_lea.hbm %s4526_s1, 24576 }
  0x14   :  { %s27_s24 = sshll.u32 %s4076_s23, 4  ;;  %p4024_p8 = scmp.ne.s32.totalorder %s4526_s1, %s4023_s27  ;;  %s28_s24 = int_to_ptr.vmem [resolvable:$true] %s27_s24 }
  0x15   :  { %p4027_p9 = scmp.lt.u32.totalorder %s4023_s27, %s4526_s1 }
  0x17   :  { %p4029_p10 = pnand %p4027_p9, %p4024_p8 }
  0x19   :  { %4032 = shalt.err (!%p4029_p10)
}
  0x1a   :  { %s4033_s4 = scalar_lea.vmem %s28_s24, 24576  ;;  %p4038_p12 = scmp.lt.s32.totalorder %s28_s24, %s28_s24 }
  0x1b   :  { %p4034_p11 = scmp.ne.s32.totalorder %s28_s24, %s4033_s4  ;;  %p4039_p13 = scmp.lt.s32.totalorder %s4033_s4, %s4033_s4 }
  0x1d   :  { %p4040_p0 = por %p4039_p13, %p4038_p12 }
  0x1f   :  { %p4041_p1 = pnand %p4040_p0, %p4034_p11 }
  0x21   :  { %4044 = shalt.err (!%p4041_p1)
}
  0x22   :  { %33 = dma.hbm_to_vmem [thread:$0]  %s4526_s1, 24576, %s28_s24, [#allocation6], %s4074_s19, %s4074_s19, %s4075_s20  }
  0x23   :  { %4067 = dma.done.wait [#allocation3], 2048  }
  0x24   :  { %4068 = vsyncadd [#allocation3], 4294965248 }
  0x25   :  { %4069 = dma.done.wait [#allocation6], 24576  }
  0x26   :  { %4070 = vsyncadd [#allocation6], 4294942720  ;;  %v4077_v0 = vmov 0.0   ;;  %vm4078_vm0 = vmmov 0   ;;  %v3777_v1 = vld [vmem:[#allocation5] sm:$0xff]   ;;  %v3779_v3 = vld [vmem:[#allocation5 + $0x8] sm:$0xff]  }
  0x27   :  { %3288 = vmatprep.subr.bf16.mxu0 %v4077_v0  ;;  %3308 = vmatprep.subr.bf16.mxu1 %v4077_v0  ;;  %v3778_v2 = vld [vmem:[#allocation5 + $0x40] sm:$0xff]   ;;  %v3780_v4 = vld [vmem:[#allocation5 + $0x48] sm:$0xff]   ;;  %v3781_v5 = vld [vmem:[#allocation5 + $0x10] sm:$0xff]   ;;  %s4079_s1 = smov [#allocation7]  }
  0x28   :  { %3304 = vmatprep.mubr.msk.bf16.mxu0 %vm4078_vm0, %v4077_v0  ;;  %3324 = vmatprep.mubr.msk.bf16.mxu1 %vm4078_vm0, %v4077_v0  ;;  %v3782_v6 = vld [vmem:[#allocation5 + $0x50] sm:$0xff]   ;;  %v3783_v7 = vld [vmem:[#allocation5 + $0x18] sm:$0xff]   ;;  %v3785_v9 = vld [vmem:[#allocation5 + $0x20] sm:$0xff]   ;;  %s2839_s6 = sshll.u32 %s4079_s1, 4  ;;  %s2840_s6 = int_to_ptr.vmem [resolvable:$true] %s2839_s6 }
  0x29   :  { %3289 = vmatpush3.bf16.msra.mxu0 %v3777_v1  ;;  %3309 = vmatpush3.bf16.msra.mxu1 %v3778_v2  ;;  %v3784_v8 = vld [vmem:[#allocation5 + $0x58] sm:$0xff]   ;;  %v3786_v10 = vld [vmem:[#allocation5 + $0x60] sm:$0xff]   ;;  %v3787_v11 = vld [vmem:[#allocation5 + $0x28] sm:$0xff]   ;;  %s4045_s7 = scalar_lea.vmem %s2840_s6, 4096  ;;  %p4050_p3 = scmp.lt.s32.totalorder %s2840_s6, %s2840_s6 }
  0x2a   :  { %3290 = vmatprep.subr.bf16.mxu0 %v4077_v0  ;;  %3310 = vmatprep.subr.bf16.mxu1 %v4077_v0  ;;  %v3788_v12 = vld [vmem:[#allocation5 + $0x68] sm:$0xff]   ;;  %v3789_v13 = vld [vmem:[#allocation5 + $0x30] sm:$0xff]   ;;  %v4137_v14 = vld [vmem:[#allocation2] sm:$0xf]  ;;  %p4046_p2 = scmp.ne.s32.totalorder %s2840_s6, %s4045_s7  ;;  %p4051_p4 = scmp.lt.s32.totalorder %s4045_s7, %s4045_s7 }
  0x2b   :  { %v4139_v15 = vld [vmem:[#allocation2 + $0x4] sm:$0xf]  ;;  %v63_v16 = vld [vmem:[#allocation2 + $0x40] sm:$0xf]  ;;  %v3790_v18 = vld [vmem:[#allocation5 + $0x70] sm:$0xff]  }
  0x2c   :  { %v64_v17 = vld [vmem:[#allocation2 + $0x44] sm:$0xf]  ;;  %v4141_v19 = vld [vmem:[#allocation2 + $0x8] sm:$0xf]  ;;  %v4143_v20 = vld [vmem:[#allocation2 + $0xc] sm:$0xf]  ;;  %v472_v23 = vadd.bf16 %v63_v16, %v4137_v14  ;;  %v2928_v33 = vcombine.low %v4137_v14, %v4139_v15  ;;  %p4052_p5 = por %p4051_p4, %p4050_p3 }
  0x2d   :  { %3291 = vmatpush3.bf16.msra.mxu0 %v3779_v3  ;;  %3311 = vmatpush3.bf16.msra.mxu1 %v3780_v4  ;;  %v65_v21 = vld [vmem:[#allocation2 + $0x48] sm:$0xf]  ;;  %v66_v22 = vld [vmem:[#allocation2 + $0x4c] sm:$0xf]  ;;  %v473_v24 = vadd.bf16 %v64_v17, %v4139_v15  ;;  %v3791_v25 = vld [vmem:[#allocation5 + $0x38] sm:$0xff]   ;;  %v2937_v34 = vcombine.low %v4141_v19, %v4143_v20 }
  0x2e   :  { %3292 = vmatprep.subr.bf16.mxu0 %v4077_v0  ;;  %3312 = vmatprep.subr.bf16.mxu1 %v4077_v0  ;;  %v474_v26 = vadd.bf16 %v65_v21, %v4141_v19  ;;  %v475_v27 = vadd.bf16 %v66_v22, %v4143_v20  ;;  %v3792_v28 = vld [vmem:[#allocation5 + $0x78] sm:$0xff]   ;;  %v3793_v31 = vld [vmem:[#allocation5 + $0x80] sm:$0xff]   ;;  %v3795_v35 = vld [vmem:[#allocation5 + $0x88] sm:$0xff]   ;;  %p4053_p6 = pnand %p4052_p5, %p4046_p2 }
  0x2f   :  { %v2856_v29 = vcombine.low %v472_v23, %v473_v24  ;;  %v3794_v32 = vld [vmem:[#allocation5 + $0xc0] sm:$0xff]   ;;  %v3796_v36 = vld [vmem:[#allocation5 + $0xc8] sm:$0xff]   ;;  %v3797_v37 = vld [vmem:[#allocation5 + $0x90] sm:$0xff]  }
  0x30   :  { %v2865_v30 = vcombine.low %v474_v26, %v475_v27  ;;  %v3798_v38 = vld [vmem:[#allocation5 + $0xd0] sm:$0xff]   ;;  %v3799_v39 = vld [vmem:[#allocation5 + $0x98] sm:$0xff]   ;;  %v3801_v41 = vld [vmem:[#allocation5 + $0xa0] sm:$0xff]  }
  0x31   :  { %3293 = vmatpush3.bf16.msra.mxu0 %v3781_v5  ;;  %3313 = vmatpush3.bf16.msra.mxu1 %v3782_v6  ;;  %v3800_v40 = vld [vmem:[#allocation5 + $0xd8] sm:$0xff]   ;;  %v3802_v42 = vld [vmem:[#allocation5 + $0xe0] sm:$0xff]   ;;  %v3803_v43 = vld [vmem:[#allocation5 + $0xa8] sm:$0xff]  }
  0x32   :  { %3294 = vmatprep.subr.bf16.mxu0 %v4077_v0  ;;  %3314 = vmatprep.subr.bf16.mxu1 %v4077_v0  ;;  %v3804_v44 = vld [vmem:[#allocation5 + $0xe8] sm:$0xff]   ;;  %v3805_v45 = vld [vmem:[#allocation5 + $0xb0] sm:$0xff]   ;;  %v4177_v51 = vld [vmem:[#allocation2 + $0x18] sm:$0xf] }
  0x33   :  { %v3806_v46 = vld [vmem:[#allocation5 + $0xf0] sm:$0xff]   ;;  %v4180_v52 = vld [vmem:[#allocation2 + $0x1c] sm:$0xf]  ;;  %v69_v53 = vld [vmem:[#allocation2 + $0x58] sm:$0xf] }
  0x34   :  { %v4173_v47 = vld [vmem:[#allocation2 + $0x10] sm:$0xf]  ;;  %v4175_v48 = vld [vmem:[#allocation2 + $0x14] sm:$0xf]  ;;  %v70_v54 = vld [vmem:[#allocation2 + $0x5c] sm:$0xf]  ;;  %v478_v58 = vadd.bf16 %v69_v53, %v4177_v51  ;;  %v2955_v3 = vcombine.low %v4177_v51, %v4180_v52 }
  0x35   :  { %3295 = vmatpush3.bf16.msra.mxu0 %v3783_v7  ;;  %3315 = vmatpush3.bf16.msra.mxu1 %v3784_v8  ;;  %v67_v49 = vld [vmem:[#allocation2 + $0x50] sm:$0xf]  ;;  %v68_v50 = vld [vmem:[#allocation2 + $0x54] sm:$0xf]  ;;  %v3807_v57 = vld [vmem:[#allocation5 + $0xb8] sm:$0xff]   ;;  %v479_v59 = vadd.bf16 %v70_v54, %v4180_v52  ;;  %v2946_v2 = vcombine.low %v4173_v47, %v4175_v48 }
  0x36   :  { %3296 = vmatprep.subr.bf16.mxu0 %v4077_v0  ;;  %3316 = vmatprep.subr.bf16.mxu1 %v4077_v0  ;;  %v476_v55 = vadd.bf16 %v67_v49, %v4173_v47  ;;  %v477_v56 = vadd.bf16 %v68_v50, %v4175_v48  ;;  %v3808_v60 = vld [vmem:[#allocation5 + $0xf8] sm:$0xff]   ;;  %v3809_v63 = vld [vmem:[#allocation5 + $0x100] sm:$0xff]   ;;  %v3811_v4 = vld [vmem:[#allocation5 + $0x108] sm:$0xff]  }
  0x37   :  { %v2883_v62 = vcombine.low %v478_v58, %v479_v59  ;;  %v3810_v1 = vld [vmem:[#allocation5 + $0x140] sm:$0xff]   ;;  %v3812_v5 = vld [vmem:[#allocation5 + $0x148] sm:$0xff]   ;;  %v3813_v6 = vld [vmem:[#allocation5 + $0x110] sm:$0xff]  }
  0x38   :  { %v2874_v61 = vcombine.low %v476_v55, %v477_v56  ;;  %v3814_v7 = vld [vmem:[#allocation5 + $0x150] sm:$0xff]   ;;  %v3815_v8 = vld [vmem:[#allocation5 + $0x118] sm:$0xff]   ;;  %v4209_v17 = vld [vmem:[#allocation2 + $0x20] sm:$0xf] }
  0x39   :  { %3297 = vmatpush3.bf16.msra.mxu0 %v3785_v9  ;;  %3317 = vmatpush3.bf16.msra.mxu1 %v3786_v10  ;;  %v3816_v9 = vld [vmem:[#allocation5 + $0x158] sm:$0xff]   ;;  %v3817_v10 = vld [vmem:[#allocation5 + $0x120] sm:$0xff]   ;;  %v3821_v16 = vld [vmem:[#allocation5 + $0x130] sm:$0xff]  }
  0x3a   :  { %3298 = vmatprep.subr.bf16.mxu0 %v4077_v0  ;;  %3318 = vmatprep.subr.bf16.mxu1 %v4077_v0  ;;  %v71_v21 = vld [vmem:[#allocation2 + $0x60] sm:$0xf]  ;;  %v72_v22 = vld [vmem:[#allocation2 + $0x64] sm:$0xf]  ;;  %v3822_v23 = vld [vmem:[#allocation5 + $0x170] sm:$0xff]  }
  0x3b   :  { %v4213_v24 = vld [vmem:[#allocation2 + $0x28] sm:$0xf]  ;;  %v74_v27 = vld [vmem:[#allocation2 + $0x6c] sm:$0xf]  ;;  %v3832_v49 = vld [vmem:[#allocation5 + $0x1d8] sm:$0xff]  }
  0x3c   :  { %v73_v26 = vld [vmem:[#allocation2 + $0x68] sm:$0xf]  ;;  %v3833_v50 = vld [vmem:[#allocation5 + $0x1a0] sm:$0xff]   ;;  %v3837_v56 = vld [vmem:[#allocation5 + $0x1b0] sm:$0xff]  }
  0x3d   :  { %3299 = vmatpush3.bf16.msra.mxu0 %v3787_v11  ;;  %3319 = vmatpush3.bf16.msra.mxu1 %v3788_v12  ;;  %v3818_v11 = vld [vmem:[#allocation5 + $0x160] sm:$0xff]   ;;  %v3819_v12 = vld [vmem:[#allocation5 + $0x128] sm:$0xff]   ;;  %v4247_v58 = vld [vmem:[#allocation2 + $0x34] sm:$0xf] }
  0x3e   :  { %3300 = vmatprep.subr.bf16.mxu0 %v4077_v0  ;;  %3320 = vmatprep.subr.bf16.mxu1 %v4077_v0  ;;  %v3834_v53 = vld [vmem:[#allocation5 + $0x1e0] sm:$0xff]   ;;  %v3835_v54 = vld [vmem:[#allocation5 + $0x1a8] sm:$0xff]   ;;  %v75_v59 = vld [vmem:[#allocation2 + $0x70] sm:$0xf] }
  0x3f   :  { %v3836_v55 = vld [vmem:[#allocation5 + $0x1e8] sm:$0xff]   ;;  %v3865_v14 = vld [vmem:[#allocation5 + $0x298] sm:$0xff]   ;;  %v3867_v19 = vld [vmem:[#allocation5 + $0x2a0] sm:$0xff]  }
  0x40   :  { %v3866_v15 = vld [vmem:[#allocation5 + $0x2d8] sm:$0xff]   ;;  %v3868_v20 = vld [vmem:[#allocation5 + $0x2e0] sm:$0xff]   ;;  %v3881_v47 = vld [vmem:[#allocation5 + $0x310] sm:$0xff]  }
  0x41   :  { %3301 = vmatpush3.bf16.msra.mxu0 %v3789_v13  ;;  %3321 = vmatpush3.bf16.msra.mxu1 %v3790_v18  ;;  %v3820_v13 = vld [vmem:[#allocation5 + $0x168] sm:$0xff]   ;;  %v4211_v18 = vld [vmem:[#allocation2 + $0x24] sm:$0xf]  ;;  %v3882_v48 = vld [vmem:[#allocation5 + $0x350] sm:$0xff]  }
  0x42   :  { %3302 = vmatprep.subr.bf16.mxu0 %v4077_v0  ;;  %3322 = vmatprep.subr.bf16.mxu1 %v4077_v0  ;;  %v3883_v51 = vld [vmem:[#allocation5 + $0x318] sm:$0xff]  }
  0x43   :  { %v3884_v52 = vld [vmem:[#allocation5 + $0x358] sm:$0xff]  }
  0x45   :  { %3303 = vmatpush3.bf16.msra.mxu0 %v3791_v25  ;;  %3323 = vmatpush3.bf16.msra.mxu1 %v3792_v28  ;;  %v4215_v25 = vld [vmem:[#allocation2 + $0x2c] sm:$0xf]  ;;  %v480_v28 = vadd.bf16 %v71_v21, %v4209_v17 }
  0x46   :  { %3328 = vmatprep.subr.bf16.mxu0 %v4077_v0  ;;  %3348 = vmatprep.subr.bf16.mxu1 %v4077_v0 }
  0x48   :  { %3305 = vmatmul.mubr.bf16.vlgmr.msra.gmra.mrb[0].mxu0 %v2856_v29  ;;  %3325 = vmatmul.mubr.bf16.vlgmr.msra.gmra.mrb[0].mxu1 %v2865_v30  ;;  %v481_v29 = vadd.bf16 %v72_v22, %v4211_v18  ;;  %v3823_v30 = vld [vmem:[#allocation5 + $0x138] sm:$0xff]  }
  0x49   :  { %3329 = vmatpush3.bf16.msra.mxu0 %v3793_v31  ;;  %3349 = vmatpush3.bf16.msra.mxu1 %v3794_v32  ;;  %v482_v31 = vadd.bf16 %v73_v26, %v4213_v24  ;;  %v483_v32 = vadd.bf16 %v74_v27, %v4215_v25  ;;  %v3844_v26 = vld [vmem:[#allocation5 + $0x248] sm:$0xff]   ;;  %v3845_v27 = vld [vmem:[#allocation5 + $0x210] sm:$0xff]  }
  0x4a   :  { %3330 = vmatprep.subr.bf16.mxu0 %v4077_v0  ;;  %3350 = vmatprep.subr.bf16.mxu1 %v4077_v0 }
  0x4b   :  { %3344 = vmatprep.mubr.msk.bf16.mxu0 %vm4078_vm0, %v4077_v0  ;;  %3364 = vmatprep.mubr.msk.bf16.mxu1 %vm4078_vm0, %v4077_v0 }
  0x4d   :  { %3331 = vmatpush3.bf16.msra.mxu0 %v3795_v35  ;;  %3351 = vmatpush3.bf16.msra.mxu1 %v3796_v36  ;;  %v3824_v35 = vld [vmem:[#allocation5 + $0x178] sm:$0xff]   ;;  %v2892_v36 = vcombine.low %v480_v28, %v481_v29  ;;  %v3846_v28 = vld [vmem:[#allocation5 + $0x250] sm:$0xff]  }
  0x4e   :  { %3332 = vmatprep.subr.bf16.mxu0 %v4077_v0  ;;  %3352 = vmatprep.subr.bf16.mxu1 %v4077_v0  ;;  %v3847_v29 = vld [vmem:[#allocation5 + $0x218] sm:$0xff]  }
  0x51   :  { %3333 = vmatpush3.bf16.msra.mxu0 %v3797_v37  ;;  %3353 = vmatpush3.bf16.msra.mxu1 %v3798_v38  ;;  %v2901_v37 = vcombine.low %v482_v31, %v483_v32  ;;  %v3825_v38 = vld [vmem:[#allocation5 + $0x180] sm:$0xff]  }
  0x52   :  { %3334 = vmatprep.subr.bf16.mxu0 %v4077_v0  ;;  %3354 = vmatprep.subr.bf16.mxu1 %v4077_v0  ;;  %v3849_v31 = vld [vmem:[#allocation5 + $0x220] sm:$0xff]  }
  0x53   :  { %v3850_v32 = vld [vmem:[#allocation5 + $0x260] sm:$0xff]  }
  0x55   :  { %3335 = vmatpush3.bf16.msra.mxu0 %v3799_v39  ;;  %3355 = vmatpush3.bf16.msra.mxu1 %v3800_v40  ;;  %v3826_v39 = vld [vmem:[#allocation5 + $0x1c0] sm:$0xff]   ;;  %v2964_v40 = vcombine.low %v4209_v17, %v4211_v18  ;;  %v3899_v17 = vld [vmem:[#allocation5 + $0x390] sm:$0xff]  }
  0x56   :  { %3336 = vmatprep.subr.bf16.mxu0 %v4077_v0  ;;  %3356 = vmatprep.subr.bf16.mxu1 %v4077_v0  ;;  %v3900_v18 = vld [vmem:[#allocation5 + $0x3d0] sm:$0xff]  }
  0x59   :  { %3337 = vmatpush3.bf16.msra.mxu0 %v3801_v41  ;;  %3357 = vmatpush3.bf16.msra.mxu1 %v3802_v42  ;;  %v2973_v41 = vcombine.low %v4213_v24, %v4215_v25  ;;  %v3827_v42 = vld [vmem:[#allocation5 + $0x188] sm:$0xff]   ;;  %v3901_v24 = vld [vmem:[#allocation5 + $0x398] sm:$0xff]  }
  0x5a   :  { %3338 = vmatprep.subr.bf16.mxu0 %v4077_v0  ;;  %3358 = vmatprep.subr.bf16.mxu1 %v4077_v0  ;;  %v3902_v25 = vld [vmem:[#allocation5 + $0x3d8] sm:$0xff]  }
  0x5d   :  { %3339 = vmatpush3.bf16.msra.mxu0 %v3803_v43  ;;  %3359 = vmatpush3.bf16.msra.mxu1 %v3804_v44  ;;  %v3828_v43 = vld [vmem:[#allocation5 + $0x1c8] sm:$0xff]   ;;  %v3829_v44 = vld [vmem:[#allocation5 + $0x190] sm:$0xff]  }
  0x5e   :  { %3340 = vmatprep.subr.bf16.mxu0 %v4077_v0  ;;  %3360 = vmatprep.subr.bf16.mxu1 %v4077_v0 }
  0x61   :  { %3341 = vmatpush3.bf16.msra.mxu0 %v3805_v45  ;;  %3361 = vmatpush3.bf16.msra.mxu1 %v3806_v46  ;;  %v3830_v45 = vld [vmem:[#allocation5 + $0x1d0] sm:$0xff]   ;;  %v3831_v46 = vld [vmem:[#allocation5 + $0x198] sm:$0xff]  }
  0x62   :  { %3342 = vmatprep.subr.bf16.mxu0 %v4077_v0  ;;  %3362 = vmatprep.subr.bf16.mxu1 %v4077_v0 }
  0x65   :  { %3343 = vmatpush3.bf16.msra.mxu0 %v3807_v57  ;;  %3363 = vmatpush3.bf16.msra.mxu1 %v3808_v60  ;;  %v4245_v57 = vld [vmem:[#allocation2 + $0x30] sm:$0xf]  ;;  %v76_v60 = vld [vmem:[#allocation2 + $0x74] sm:$0xf] }
  0x66   :  { %3368 = vmatprep.subr.bf16.mxu0 %v4077_v0  ;;  %3388 = vmatprep.subr.bf16.mxu1 %v4077_v0  ;;  %v2982_v21 = vcombine.low %v4245_v57, %v4247_v58 }
  0x68   :  { %3345 = vmatmul.mubr.bf16.vlgmr.msra.gmra.mrb[4].mxu0 %v2874_v61  ;;  %3365 = vmatmul.mubr.bf16.vlgmr.msra.gmra.mrb[4].mxu1 %v2883_v62  ;;  %v3838_v61 = vld [vmem:[#allocation5 + $0x1f0] sm:$0xff]   ;;  %v4249_v62 = vld [vmem:[#allocation2 + $0x38] sm:$0xf] }
  0x69   :  { %3369 = vmatpush3.bf16.msra.mxu0 %v3809_v63  ;;  %3389 = vmatpush3.bf16.msra.mxu1 %v3810_v1  ;;  %v4251_v63 = vld [vmem:[#allocation2 + $0x3c] sm:$0xf]  ;;  %v77_v1 = vld [vmem:[#allocation2 + $0x78] sm:$0xf] }
  0x6a   :  { %3370 = vmatprep.subr.bf16.mxu0 %v4077_v0  ;;  %3390 = vmatprep.subr.bf16.mxu1 %v4077_v0  ;;  %v2991_v22 = vcombine.low %v4249_v62, %v4251_v63 }
  0x6b   :  { %3384 = vmatprep.mubr.msk.bf16.mxu0 %vm4078_vm0, %v4077_v0  ;;  %3404 = vmatprep.mubr.msk.bf16.mxu1 %vm4078_vm0, %v4077_v0 }
  0x6d   :  { %3371 = vmatpush3.bf16.msra.mxu0 %v3811_v4  ;;  %3391 = vmatpush3.bf16.msra.mxu1 %v3812_v5  ;;  %v78_v4 = vld [vmem:[#allocation2 + $0x7c] sm:$0xf]  ;;  %v484_v5 = vadd.bf16 %v75_v59, %v4245_v57  ;;  %v3877_v59 = vld [vmem:[#allocation5 + $0x300] sm:$0xff]   ;;  %v3917_v57 = vld [vmem:[#allocation5 + $0x410] sm:$0xff]  }
  0x6e   :  { %3372 = vmatprep.subr.bf16.mxu0 %v4077_v0  ;;  %3392 = vmatprep.subr.bf16.mxu1 %v4077_v0 }
  0x71   :  { %3373 = vmatpush3.bf16.msra.mxu0 %v3813_v6  ;;  %3393 = vmatpush3.bf16.msra.mxu1 %v3814_v7  ;;  %v485_v6 = vadd.bf16 %v76_v60, %v4247_v58  ;;  %v3839_v7 = vld [vmem:[#allocation5 + $0x1b8] sm:$0xff]   ;;  %v3878_v60 = vld [vmem:[#allocation5 + $0x340] sm:$0xff]   ;;  %v3918_v58 = vld [vmem:[#allocation5 + $0x450] sm:$0xff]  }
  0x72   :  { %3374 = vmatprep.subr.bf16.mxu0 %v4077_v0  ;;  %3394 = vmatprep.subr.bf16.mxu1 %v4077_v0 }
  0x75   :  { %3375 = vmatpush3.bf16.msra.mxu0 %v3815_v8  ;;  %3395 = vmatpush3.bf16.msra.mxu1 %v3816_v9  ;;  %v486_v8 = vadd.bf16 %v77_v1, %v4249_v62  ;;  %v487_v9 = vadd.bf16 %v78_v4, %v4251_v63  ;;  %v3880_v1 = vld [vmem:[#allocation5 + $0x348] sm:$0xff]   ;;  %v3919_v62 = vld [vmem:[#allocation5 + $0x418] sm:$0xff]  }
  0x76   :  { %3376 = vmatprep.subr.bf16.mxu0 %v4077_v0  ;;  %3396 = vmatprep.subr.bf16.mxu1 %v4077_v0  ;;  %v3887_v4 = vld [vmem:[#allocation5 + $0x328] sm:$0xff]   ;;  %v3920_v63 = vld [vmem:[#allocation5 + $0x458] sm:$0xff]  }
  0x79   :  { %3377 = vmatpush3.bf16.msra.mxu0 %v3817_v10  ;;  %3397 = vmatpush3.bf16.msra.mxu1 %v3818_v11  ;;  %v3840_v10 = vld [vmem:[#allocation5 + $0x1f8] sm:$0xff]   ;;  %v2910_v11 = vcombine.low %v484_v5, %v485_v6  ;;  %v3888_v5 = vld [vmem:[#allocation5 + $0x368] sm:$0xff]   ;;  %v3889_v6 = vld [vmem:[#allocation5 + $0x330] sm:$0xff]  }
  0x7a   :  { %3378 = vmatprep.subr.bf16.mxu0 %v4077_v0  ;;  %3398 = vmatprep.subr.bf16.mxu1 %v4077_v0 }
  0x7d   :  { %3379 = vmatpush3.bf16.msra.mxu0 %v3819_v12  ;;  %3399 = vmatpush3.bf16.msra.mxu1 %v3820_v13  ;;  %v2919_v12 = vcombine.low %v486_v8, %v487_v9  ;;  %v3841_v13 = vld [vmem:[#allocation5 + $0x200] sm:$0xff]   ;;  %v3891_v8 = vld [vmem:[#allocation5 + $0x338] sm:$0xff]  }
  0x7e   :  { %3380 = vmatprep.subr.bf16.mxu0 %v4077_v0  ;;  %3400 = vmatprep.subr.bf16.mxu1 %v4077_v0  ;;  %v3892_v9 = vld [vmem:[#allocation5 + $0x378] sm:$0xff]  }
  0x81   :  { %3381 = vmatpush3.bf16.msra.mxu0 %v3821_v16  ;;  %3401 = vmatpush3.bf16.msra.mxu1 %v3822_v23  ;;  %v3842_v16 = vld [vmem:[#allocation5 + $0x240] sm:$0xff]   ;;  %v3843_v23 = vld [vmem:[#allocation5 + $0x208] sm:$0xff]  }
  0x82   :  { %3382 = vmatprep.subr.bf16.mxu0 %v4077_v0  ;;  %3402 = vmatprep.subr.bf16.mxu1 %v4077_v0 }
  0x85   :  { %3383 = vmatpush3.bf16.msra.mxu0 %v3823_v30  ;;  %3403 = vmatpush3.bf16.msra.mxu1 %v3824_v35  ;;  %v3848_v30 = vld [vmem:[#allocation5 + $0x258] sm:$0xff]   ;;  %v3851_v35 = vld [vmem:[#allocation5 + $0x228] sm:$0xff]  }
  0x86   :  { %3408 = vmatprep.subr.bf16.mxu0 %v4077_v0  ;;  %3428 = vmatprep.subr.bf16.mxu1 %v4077_v0 }
  0x88   :  { %3385 = vmatmul.mubr.bf16.vlgmr.msra.gmra.mrb[8].mxu0 %v2892_v36  ;;  %3405 = vmatmul.mubr.bf16.vlgmr.msra.gmra.mrb[8].mxu1 %v2901_v37  ;;  %v3852_v36 = vld [vmem:[#allocation5 + $0x268] sm:$0xff]   ;;  %v3853_v37 = vld [vmem:[#allocation5 + $0x230] sm:$0xff]  }
  0x89   :  { %3409 = vmatpush3.bf16.msra.mxu0 %v3825_v38  ;;  %3429 = vmatpush3.bf16.msra.mxu1 %v3826_v39  ;;  %v3854_v38 = vld [vmem:[#allocation5 + $0x270] sm:$0xff]   ;;  %v3855_v39 = vld [vmem:[#allocation5 + $0x238] sm:$0xff]  }
  0x8a   :  { %3410 = vmatprep.subr.bf16.mxu0 %v4077_v0  ;;  %3430 = vmatprep.subr.bf16.mxu1 %v4077_v0 }
  0x8b   :  { %3424 = vmatprep.mubr.msk.bf16.mxu0 %vm4078_vm0, %v4077_v0  ;;  %3444 = vmatprep.mubr.msk.bf16.mxu1 %vm4078_vm0, %v4077_v0 }
  0x8d   :  { %3411 = vmatpush3.bf16.msra.mxu0 %v3827_v42  ;;  %3431 = vmatpush3.bf16.msra.mxu1 %v3828_v43  ;;  %v3856_v42 = vld [vmem:[#allocation5 + $0x278] sm:$0xff]   ;;  %v3859_v43 = vld [vmem:[#allocation5 + $0x280] sm:$0xff]  }
  0x8e   :  { %3412 = vmatprep.subr.bf16.mxu0 %v4077_v0  ;;  %3432 = vmatprep.subr.bf16.mxu1 %v4077_v0 }
  0x91   :  { %3413 = vmatpush3.bf16.msra.mxu0 %v3829_v44  ;;  %3433 = vmatpush3.bf16.msra.mxu1 %v3830_v45  ;;  %v3860_v44 = vld [vmem:[#allocation5 + $0x2c0] sm:$0xff]   ;;  %v3861_v45 = vld [vmem:[#allocation5 + $0x288] sm:$0xff]  }
  0x92   :  { %3414 = vmatprep.subr.bf16.mxu0 %v4077_v0  ;;  %3434 = vmatprep.subr.bf16.mxu1 %v4077_v0 }
  0x95   :  { %3415 = vmatpush3.bf16.msra.mxu0 %v3831_v46  ;;  %3435 = vmatpush3.bf16.msra.mxu1 %v3832_v49  ;;  %v3862_v46 = vld [vmem:[#allocation5 + $0x2c8] sm:$0xff]   ;;  %v3863_v49 = vld [vmem:[#allocation5 + $0x290] sm:$0xff]  }
  0x96   :  { %3416 = vmatprep.subr.bf16.mxu0 %v4077_v0  ;;  %3436 = vmatprep.subr.bf16.mxu1 %v4077_v0 }
  0x99   :  { %3417 = vmatpush3.bf16.msra.mxu0 %v3833_v50  ;;  %3437 = vmatpush3.bf16.msra.mxu1 %v3834_v53  ;;  %v3864_v50 = vld [vmem:[#allocation5 + $0x2d0] sm:$0xff]  }
  0x9a   :  { %3418 = vmatprep.subr.bf16.mxu0 %v4077_v0  ;;  %3438 = vmatprep.subr.bf16.mxu1 %v4077_v0  ;;  %v3871_v53 = vld [vmem:[#allocation5 + $0x2b0] sm:$0xff]  }
  0x9d   :  { %3419 = vmatpush3.bf16.msra.mxu0 %v3835_v54  ;;  %3439 = vmatpush3.bf16.msra.mxu1 %v3836_v55  ;;  %v3872_v54 = vld [vmem:[#allocation5 + $0x2f0] sm:$0xff]   ;;  %v3873_v55 = vld [vmem:[#allocation5 + $0x2b8] sm:$0xff]  }
  0x9e   :  { %3420 = vmatprep.subr.bf16.mxu0 %v4077_v0  ;;  %3440 = vmatprep.subr.bf16.mxu1 %v4077_v0 }
  0xa1   :  { %3421 = vmatpush3.bf16.msra.mxu0 %v3837_v56  ;;  %3441 = vmatpush3.bf16.msra.mxu1 %v3838_v61  ;;  %v3874_v56 = vld [vmem:[#allocation5 + $0x2f8] sm:$0xff]   ;;  %v3879_v61 = vld [vmem:[#allocation5 + $0x308] sm:$0xff]  }
  0xa2   :  { %3422 = vmatprep.subr.bf16.mxu0 %v4077_v0  ;;  %3442 = vmatprep.subr.bf16.mxu1 %v4077_v0 }
  0xa5   :  { %3423 = vmatpush3.bf16.msra.mxu0 %v3839_v7  ;;  %3443 = vmatpush3.bf16.msra.mxu1 %v3840_v10  ;;  %v3890_v7 = vld [vmem:[#allocation5 + $0x370] sm:$0xff]   ;;  %v3895_v10 = vld [vmem:[#allocation5 + $0x380] sm:$0xff]  }
  0xa6   :  { %3448 = vmatprep.subr.bf16.mxu0 %v4077_v0  ;;  %3468 = vmatprep.subr.bf16.mxu1 %v4077_v0 }
  0xa8   :  { %3425 = vmatmul.mubr.bf16.vlgmr.msra.gmra.mrb[12].mxu0 %v2910_v11  ;;  %3445 = vmatmul.mubr.bf16.vlgmr.msra.gmra.mrb[12].mxu1 %v2919_v12  ;;  %v3896_v11 = vld [vmem:[#allocation5 + $0x3c0] sm:$0xff]   ;;  %v3897_v12 = vld [vmem:[#allocation5 + $0x388] sm:$0xff]  }
  0xa9   :  { %3449 = vmatpush3.bf16.msra.mxu0 %v3841_v13  ;;  %3469 = vmatpush3.bf16.msra.mxu1 %v3842_v16  ;;  %v3898_v13 = vld [vmem:[#allocation5 + $0x3c8] sm:$0xff]  }
  0xaa   :  { %3450 = vmatprep.subr.bf16.mxu0 %v4077_v0  ;;  %3470 = vmatprep.subr.bf16.mxu1 %v4077_v0  ;;  %v3905_v16 = vld [vmem:[#allocation5 + $0x3a8] sm:$0xff]  }
  0xab   :  { %3464 = vmatprep.mubr.msk.bf16.mxu0 %vm4078_vm0, %v4077_v0  ;;  %3484 = vmatprep.mubr.msk.bf16.mxu1 %vm4078_vm0, %v4077_v0 }
  0xad   :  { %3451 = vmatpush3.bf16.msra.mxu0 %v3843_v23  ;;  %3471 = vmatpush3.bf16.msra.mxu1 %v3844_v26  ;;  %v3906_v23 = vld [vmem:[#allocation5 + $0x3e8] sm:$0xff]  }
  0xae   :  { %3452 = vmatprep.subr.bf16.mxu0 %v4077_v0  ;;  %3472 = vmatprep.subr.bf16.mxu1 %v4077_v0 }
  0xb1   :  { %3453 = vmatpush3.bf16.msra.mxu0 %v3845_v27  ;;  %3473 = vmatpush3.bf16.msra.mxu1 %v3846_v28 }
  0xb2   :  { %3454 = vmatprep.subr.bf16.mxu0 %v4077_v0  ;;  %3474 = vmatprep.subr.bf16.mxu1 %v4077_v0 }
  0xb5   :  { %3455 = vmatpush3.bf16.msra.mxu0 %v3847_v29  ;;  %3475 = vmatpush3.bf16.msra.mxu1 %v3848_v30 }
  0xb6   :  { %3456 = vmatprep.subr.bf16.mxu0 %v4077_v0  ;;  %3476 = vmatprep.subr.bf16.mxu1 %v4077_v0 }
  0xb9   :  { %3457 = vmatpush3.bf16.msra.mxu0 %v3849_v31  ;;  %3477 = vmatpush3.bf16.msra.mxu1 %v3850_v32  ;;  %v3907_v31 = vld [vmem:[#allocation5 + $0x3b0] sm:$0xff]  }
  0xba   :  { %3458 = vmatprep.subr.bf16.mxu0 %v4077_v0  ;;  %3478 = vmatprep.subr.bf16.mxu1 %v4077_v0 }
  0xbd   :  { %3459 = vmatpush3.bf16.msra.mxu0 %v3851_v35  ;;  %3479 = vmatpush3.bf16.msra.mxu1 %v3852_v36  ;;  %v3908_v36 = vld [vmem:[#allocation5 + $0x3f0] sm:$0xff]  }
  0xbe   :  { %3460 = vmatprep.subr.bf16.mxu0 %v4077_v0  ;;  %3480 = vmatprep.subr.bf16.mxu1 %v4077_v0 }
  0xc1   :  { %3461 = vmatpush3.bf16.msra.mxu0 %v3853_v37  ;;  %3481 = vmatpush3.bf16.msra.mxu1 %v3854_v38  ;;  %v3909_v38 = vld [vmem:[#allocation5 + $0x3b8] sm:$0xff]  }
  0xc2   :  { %3462 = vmatprep.subr.bf16.mxu0 %v4077_v0  ;;  %3482 = vmatprep.subr.bf16.mxu1 %v4077_v0 }
  0xc5   :  { %3463 = vmatpush3.bf16.msra.mxu0 %v3855_v39  ;;  %3483 = vmatpush3.bf16.msra.mxu1 %v3856_v42  ;;  %v3910_v39 = vld [vmem:[#allocation5 + $0x3f8] sm:$0xff]   ;;  %v3913_v42 = vld [vmem:[#allocation5 + $0x400] sm:$0xff]  }
  0xc6   :  { %3488 = vmatprep.subr.bf16.mxu0 %v4077_v0  ;;  %3508 = vmatprep.subr.bf16.mxu1 %v4077_v0 }
  0xc8   :  { %3465 = vmatmul.mubr.bf16.vlgmr.msra.gmra.mrb[16].mxu0 %v2928_v33  ;;  %3485 = vmatmul.mubr.bf16.vlgmr.msra.gmra.mrb[16].mxu1 %v2937_v34  ;;  %v3869_v33 = vld [vmem:[#allocation5 + $0x2a8] sm:$0xff]  }
  0xc9   :  { %3489 = vmatpush3.bf16.msra.mxu0 %v3859_v43  ;;  %3509 = vmatpush3.bf16.msra.mxu1 %v3860_v44  ;;  %v3870_v34 = vld [vmem:[#allocation5 + $0x2e8] sm:$0xff]   ;;  %v3914_v43 = vld [vmem:[#allocation5 + $0x440] sm:$0xff]  }
  0xca   :  { %3490 = vmatprep.subr.bf16.mxu0 %v4077_v0  ;;  %3510 = vmatprep.subr.bf16.mxu1 %v4077_v0  ;;  %v3915_v44 = vld [vmem:[#allocation5 + $0x408] sm:$0xff]  }
  0xcb   :  { %3504 = vmatprep.mubr.msk.bf16.mxu0 %vm4078_vm0, %v4077_v0  ;;  %3524 = vmatprep.mubr.msk.bf16.mxu1 %vm4078_vm0, %v4077_v0 }
  0xcd   :  { %3491 = vmatpush3.bf16.msra.mxu0 %v3861_v45  ;;  %3511 = vmatpush3.bf16.msra.mxu1 %v3862_v46  ;;  %v3916_v45 = vld [vmem:[#allocation5 + $0x448] sm:$0xff]  }
  0xce   :  { %3492 = vmatprep.subr.bf16.mxu0 %v4077_v0  ;;  %3512 = vmatprep.subr.bf16.mxu1 %v4077_v0  ;;  %v3923_v46 = vld [vmem:[#allocation5 + $0x428] sm:$0xff]  }
  0xd1   :  { %3493 = vmatpush3.bf16.msra.mxu0 %v3863_v49  ;;  %3513 = vmatpush3.bf16.msra.mxu1 %v3864_v50  ;;  %v3924_v49 = vld [vmem:[#allocation5 + $0x468] sm:$0xff]  }
  0xd2   :  { %3494 = vmatprep.subr.bf16.mxu0 %v4077_v0  ;;  %3514 = vmatprep.subr.bf16.mxu1 %v4077_v0 }
  0xd5   :  { %3495 = vmatpush3.bf16.msra.mxu0 %v3865_v14  ;;  %3515 = vmatpush3.bf16.msra.mxu1 %v3866_v15 }
  0xd6   :  { %3496 = vmatprep.subr.bf16.mxu0 %v4077_v0  ;;  %3516 = vmatprep.subr.bf16.mxu1 %v4077_v0 }
  0xd9   :  { %3497 = vmatpush3.bf16.msra.mxu0 %v3867_v19  ;;  %3517 = vmatpush3.bf16.msra.mxu1 %v3868_v20 }
  0xda   :  { %3498 = vmatprep.subr.bf16.mxu0 %v4077_v0  ;;  %3518 = vmatprep.subr.bf16.mxu1 %v4077_v0 }
  0xdd   :  { %3499 = vmatpush3.bf16.msra.mxu0 %v3869_v33  ;;  %3519 = vmatpush3.bf16.msra.mxu1 %v3870_v34  ;;  %v3925_v33 = vld [vmem:[#allocation5 + $0x430] sm:$0xff]  }
  0xde   :  { %3500 = vmatprep.subr.bf16.mxu0 %v4077_v0  ;;  %3520 = vmatprep.subr.bf16.mxu1 %v4077_v0 }
  0xe1   :  { %3501 = vmatpush3.bf16.msra.mxu0 %v3871_v53  ;;  %3521 = vmatpush3.bf16.msra.mxu1 %v3872_v54  ;;  %v3926_v54 = vld [vmem:[#allocation5 + $0x470] sm:$0xff]  }
  0xe2   :  { %3502 = vmatprep.subr.bf16.mxu0 %v4077_v0  ;;  %3522 = vmatprep.subr.bf16.mxu1 %v4077_v0 }
  0xe5   :  { %3503 = vmatpush3.bf16.msra.mxu0 %v3873_v55  ;;  %3523 = vmatpush3.bf16.msra.mxu1 %v3874_v56  ;;  %v3927_v56 = vld [vmem:[#allocation5 + $0x438] sm:$0xff]  }
  0xe6   :  { %3528 = vmatprep.subr.bf16.mxu0 %v4077_v0  ;;  %3548 = vmatprep.subr.bf16.mxu1 %v4077_v0 }
  0xe8   :  { %3505 = vmatmul.mubr.bf16.vlgmr.msra.gmra.mrb[20].mxu0 %v2946_v2  ;;  %3525 = vmatmul.mubr.bf16.vlgmr.msra.gmra.mrb[20].mxu1 %v2955_v3  ;;  %v3885_v2 = vld [vmem:[#allocation5 + $0x320] sm:$0xff]  }
  0xe9   :  { %3529 = vmatpush3.bf16.msra.mxu0 %v3877_v59  ;;  %3549 = vmatpush3.bf16.msra.mxu1 %v3878_v60  ;;  %v3886_v3 = vld [vmem:[#allocation5 + $0x360] sm:$0xff]   ;;  %v3928_v59 = vld [vmem:[#allocation5 + $0x478] sm:$0xff]  }
  0xea   :  { %3530 = vmatprep.subr.bf16.mxu0 %v4077_v0  ;;  %3550 = vmatprep.subr.bf16.mxu1 %v4077_v0  ;;  %v3985_v60 = vld [vmem:[#allocation2 + $0x40] sm:$0xf] }
  0xeb   :  { %3544 = vmatprep.mubr.msk.bf16.mxu0 %vm4078_vm0, %v4077_v0  ;;  %3564 = vmatprep.mubr.msk.bf16.mxu1 %vm4078_vm0, %v4077_v0 }
  0xed   :  { %3531 = vmatpush3.bf16.msra.mxu0 %v3879_v61  ;;  %3551 = vmatpush3.bf16.msra.mxu1 %v3880_v1  ;;  %v3986_v61 = vld [vmem:[#allocation2 + $0x44] sm:$0xf] }
  0xee   :  { %3532 = vmatprep.subr.bf16.mxu0 %v4077_v0  ;;  %3552 = vmatprep.subr.bf16.mxu1 %v4077_v0  ;;  %v3000_v1 = vcombine.low %v3985_v60, %v3986_v61  ;;  %v3962_v61 = vld [vmem:[#allocation5 + $0x570] sm:$0xff]  }
  0xf1   :  { %3533 = vmatpush3.bf16.msra.mxu0 %v3881_v47  ;;  %3553 = vmatpush3.bf16.msra.mxu1 %v3882_v48  ;;  %v3987_v47 = vld [vmem:[#allocation2 + $0x48] sm:$0xf]  ;;  %v3988_v48 = vld [vmem:[#allocation2 + $0x4c] sm:$0xf] }
  0xf2   :  { %3534 = vmatprep.subr.bf16.mxu0 %v4077_v0  ;;  %3554 = vmatprep.subr.bf16.mxu1 %v4077_v0 }
  0xf5   :  { %3535 = vmatpush3.bf16.msra.mxu0 %v3883_v51  ;;  %3555 = vmatpush3.bf16.msra.mxu1 %v3884_v52  ;;  %v3009_v51 = vcombine.low %v3987_v47, %v3988_v48  ;;  %v3931_v52 = vld [vmem:[#allocation5 + $0x480] sm:$0xff]   ;;  %v3963_v47 = vld [vmem:[#allocation5 + $0x538] sm:$0xff]  }
  0xf6   :  { %3536 = vmatprep.subr.bf16.mxu0 %v4077_v0  ;;  %3556 = vmatprep.subr.bf16.mxu1 %v4077_v0  ;;  %v3964_v48 = vld [vmem:[#allocation5 + $0x578] sm:$0xff]  }
  0xf9   :  { %3537 = vmatpush3.bf16.msra.mxu0 %v3885_v2  ;;  %3557 = vmatpush3.bf16.msra.mxu1 %v3886_v3  ;;  %v3932_v2 = vld [vmem:[#allocation5 + $0x4c0] sm:$0xff]   ;;  %v3933_v3 = vld [vmem:[#allocation5 + $0x488] sm:$0xff]  }
  0xfa   :  { %3538 = vmatprep.subr.bf16.mxu0 %v4077_v0  ;;  %3558 = vmatprep.subr.bf16.mxu1 %v4077_v0 }
  0xfd   :  { %3539 = vmatpush3.bf16.msra.mxu0 %v3887_v4  ;;  %3559 = vmatpush3.bf16.msra.mxu1 %v3888_v5  ;;  %v3934_v4 = vld [vmem:[#allocation5 + $0x4c8] sm:$0xff]   ;;  %v3935_v5 = vld [vmem:[#allocation5 + $0x490] sm:$0xff]  }
  0xfe   :  { %3540 = vmatprep.subr.bf16.mxu0 %v4077_v0  ;;  %3560 = vmatprep.subr.bf16.mxu1 %v4077_v0 }
 0x101   :  { %3541 = vmatpush3.bf16.msra.mxu0 %v3889_v6  ;;  %3561 = vmatpush3.bf16.msra.mxu1 %v3890_v7  ;;  %v3936_v6 = vld [vmem:[#allocation5 + $0x4d0] sm:$0xff]   ;;  %v3937_v7 = vld [vmem:[#allocation5 + $0x498] sm:$0xff]  }
 0x102   :  { %3542 = vmatprep.subr.bf16.mxu0 %v4077_v0  ;;  %3562 = vmatprep.subr.bf16.mxu1 %v4077_v0 }
 0x105   :  { %3543 = vmatpush3.bf16.msra.mxu0 %v3891_v8  ;;  %3563 = vmatpush3.bf16.msra.mxu1 %v3892_v9  ;;  %v3938_v8 = vld [vmem:[#allocation5 + $0x4d8] sm:$0xff]   ;;  %v3939_v9 = vld [vmem:[#allocation5 + $0x4a0] sm:$0xff]  }
 0x106   :  { %3568 = vmatprep.subr.bf16.mxu0 %v4077_v0  ;;  %3588 = vmatprep.subr.bf16.mxu1 %v4077_v0 }
 0x108   :  { %3545 = vmatmul.mubr.bf16.vlgmr.msra.gmra.mrb[24].mxu0 %v2964_v40  ;;  %3565 = vmatmul.mubr.bf16.vlgmr.msra.gmra.mrb[24].mxu1 %v2973_v41  ;;  %v3903_v40 = vld [vmem:[#allocation5 + $0x3a0] sm:$0xff]  }
 0x109   :  { %3569 = vmatpush3.bf16.msra.mxu0 %v3895_v10  ;;  %3589 = vmatpush3.bf16.msra.mxu1 %v3896_v11  ;;  %v3904_v41 = vld [vmem:[#allocation5 + $0x3e0] sm:$0xff]   ;;  %v3941_v11 = vld [vmem:[#allocation5 + $0x4a8] sm:$0xff]  }
 0x10a   :  { %3570 = vmatprep.subr.bf16.mxu0 %v4077_v0  ;;  %3590 = vmatprep.subr.bf16.mxu1 %v4077_v0  ;;  %v3940_v10 = vld [vmem:[#allocation5 + $0x4e0] sm:$0xff]  }
 0x10b   :  { %3584 = vmatprep.mubr.msk.bf16.mxu0 %vm4078_vm0, %v4077_v0  ;;  %3604 = vmatprep.mubr.msk.bf16.mxu1 %vm4078_vm0, %v4077_v0 }
 0x10d   :  { %3571 = vmatpush3.bf16.msra.mxu0 %v3897_v12  ;;  %3591 = vmatpush3.bf16.msra.mxu1 %v3898_v13  ;;  %v3942_v12 = vld [vmem:[#allocation5 + $0x4e8] sm:$0xff]  }
 0x10e   :  { %3572 = vmatprep.subr.bf16.mxu0 %v4077_v0  ;;  %3592 = vmatprep.subr.bf16.mxu1 %v4077_v0 }
 0x111   :  { %3573 = vmatpush3.bf16.msra.mxu0 %v3899_v17  ;;  %3593 = vmatpush3.bf16.msra.mxu1 %v3900_v18 }
 0x112   :  { %3574 = vmatprep.subr.bf16.mxu0 %v4077_v0  ;;  %3594 = vmatprep.subr.bf16.mxu1 %v4077_v0 }
 0x115   :  { %3575 = vmatpush3.bf16.msra.mxu0 %v3901_v24  ;;  %3595 = vmatpush3.bf16.msra.mxu1 %v3902_v25 }
 0x116   :  { %3576 = vmatprep.subr.bf16.mxu0 %v4077_v0  ;;  %3596 = vmatprep.subr.bf16.mxu1 %v4077_v0 }
 0x119   :  { %3577 = vmatpush3.bf16.msra.mxu0 %v3903_v40  ;;  %3597 = vmatpush3.bf16.msra.mxu1 %v3904_v41  ;;  %v3943_v40 = vld [vmem:[#allocation5 + $0x4b0] sm:$0xff]  }
 0x11a   :  { %3578 = vmatprep.subr.bf16.mxu0 %v4077_v0  ;;  %3598 = vmatprep.subr.bf16.mxu1 %v4077_v0 }
 0x11b   :  { %v4358_v26 = vpop.f32.mrb[0].mxu0  ;;  %v4361_v27 = vpop.f32.mrb[0].mxu1 }
 0x11c   :  { %v3306_v28 = vpop.f32.mrb[1].mxu0  ;;  %v3326_v29 = vpop.f32.mrb[1].mxu1 }
 0x11d   :  { %v4363_v30 = vpop.f32.mrb[2].mxu0  ;;  %3579 = vmatpush3.bf16.msra.mxu0 %v3905_v16  ;;  %v4365_v32 = vpop.f32.mrb[2].mxu1  ;;  %3599 = vmatpush3.bf16.msra.mxu1 %v3906_v23  ;;  %v3944_v23 = vld [vmem:[#allocation5 + $0x4f0] sm:$0xff]   ;;  %v3945_v29 = vld [vmem:[#allocation5 + $0x4b8] sm:$0xff]  }
 0x11e   :  { %v3307_v35 = vpop.f32.mrb[3].mxu0  ;;  %3580 = vmatprep.subr.bf16.mxu0 %v4077_v0  ;;  %v3327_v37 = vpop.f32.mrb[3].mxu1  ;;  %3600 = vmatprep.subr.bf16.mxu1 %v4077_v0 }
 0x11f   :  { %v3989_v35 = vld [vmem:[#allocation2 + $0x50] sm:$0xf] }
 0x121   :  { %3581 = vmatpush3.bf16.msra.mxu0 %v3907_v31  ;;  %3601 = vmatpush3.bf16.msra.mxu1 %v3908_v36  ;;  %v3946_v31 = vld [vmem:[#allocation5 + $0x4f8] sm:$0xff]   ;;  %v3990_v36 = vld [vmem:[#allocation2 + $0x54] sm:$0xf] }
 0x122   :  { %3582 = vmatprep.subr.bf16.mxu0 %v4077_v0  ;;  %3602 = vmatprep.subr.bf16.mxu1 %v4077_v0  ;;  %v3018_v37 = vcombine.low %v3989_v35, %v3990_v36 }
 0x125   :  { %3583 = vmatpush3.bf16.msra.mxu0 %v3909_v38  ;;  %3603 = vmatpush3.bf16.msra.mxu1 %v3910_v39  ;;  %v3991_v38 = vld [vmem:[#allocation2 + $0x58] sm:$0xf]  ;;  %v3992_v39 = vld [vmem:[#allocation2 + $0x5c] sm:$0xf] }
 0x126   :  { %3608 = vmatprep.subr.bf16.mxu0 %v4077_v0  ;;  %3628 = vmatprep.subr.bf16.mxu1 %v4077_v0 }
 0x128   :  { %3585 = vmatmul.mubr.bf16.vlgmr.msra.gmra.mrb[28].mxu0 %v2982_v21  ;;  %3605 = vmatmul.mubr.bf16.vlgmr.msra.gmra.mrb[28].mxu1 %v2991_v22  ;;  %v3921_v21 = vld [vmem:[#allocation5 + $0x420] sm:$0xff]  }
 0x129   :  { %3609 = vmatpush3.bf16.msra.mxu0 %v3913_v42  ;;  %3629 = vmatpush3.bf16.msra.mxu1 %v3914_v43  ;;  %v3922_v22 = vld [vmem:[#allocation5 + $0x460] sm:$0xff]   ;;  %v3027_v42 = vcombine.low %v3991_v38, %v3992_v39  ;;  %v3979_v39 = vld [vmem:[#allocation5 + $0x5b0] sm:$0xff]  }
 0x12a   :  { %3610 = vmatprep.subr.bf16.mxu0 %v4077_v0  ;;  %3630 = vmatprep.subr.bf16.mxu1 %v4077_v0  ;;  %v3949_v43 = vld [vmem:[#allocation5 + $0x500] sm:$0xff]  }
 0x12b   :  { %3624 = vmatprep.mubr.msk.bf16.mxu0 %vm4078_vm0, %v4077_v0  ;;  %3644 = vmatprep.mubr.msk.bf16.mxu1 %vm4078_vm0, %v4077_v0 }
 0x12d   :  { %3611 = vmatpush3.bf16.msra.mxu0 %v3915_v44  ;;  %3631 = vmatpush3.bf16.msra.mxu1 %v3916_v45  ;;  %v3950_v44 = vld [vmem:[#allocation5 + $0x540] sm:$0xff]   ;;  %v3951_v45 = vld [vmem:[#allocation5 + $0x508] sm:$0xff]  }
 0x12e   :  { %3612 = vmatprep.subr.bf16.mxu0 %v4077_v0  ;;  %3632 = vmatprep.subr.bf16.mxu1 %v4077_v0 }
 0x131   :  { %3613 = vmatpush3.bf16.msra.mxu0 %v3917_v57  ;;  %3633 = vmatpush3.bf16.msra.mxu1 %v3918_v58  ;;  %v3952_v57 = vld [vmem:[#allocation5 + $0x548] sm:$0xff]   ;;  %v3953_v58 = vld [vmem:[#allocation5 + $0x510] sm:$0xff]  }
 0x132   :  { %3614 = vmatprep.subr.bf16.mxu0 %v4077_v0  ;;  %3634 = vmatprep.subr.bf16.mxu1 %v4077_v0 }
 0x135   :  { %3615 = vmatpush3.bf16.msra.mxu0 %v3919_v62  ;;  %3635 = vmatpush3.bf16.msra.mxu1 %v3920_v63  ;;  %v3954_v62 = vld [vmem:[#allocation5 + $0x550] sm:$0xff]   ;;  %v3955_v63 = vld [vmem:[#allocation5 + $0x518] sm:$0xff]  }
 0x136   :  { %3616 = vmatprep.subr.bf16.mxu0 %v4077_v0  ;;  %3636 = vmatprep.subr.bf16.mxu1 %v4077_v0 }
 0x139   :  { %3617 = vmatpush3.bf16.msra.mxu0 %v3921_v21  ;;  %3637 = vmatpush3.bf16.msra.mxu1 %v3922_v22  ;;  %v3956_v21 = vld [vmem:[#allocation5 + $0x558] sm:$0xff]   ;;  %v3957_v22 = vld [vmem:[#allocation5 + $0x520] sm:$0xff]  }
 0x13a   :  { %3618 = vmatprep.subr.bf16.mxu0 %v4077_v0  ;;  %3638 = vmatprep.subr.bf16.mxu1 %v4077_v0 }
 0x13b   :  { %v4392_v50 = vpop.f32.mrb[4].mxu0  ;;  %v4395_v14 = vpop.f32.mrb[4].mxu1 }
 0x13c   :  { %v3346_v15 = vpop.f32.mrb[5].mxu0  ;;  %v3366_v19 = vpop.f32.mrb[5].mxu1 }
 0x13d   :  { %v4397_v20 = vpop.f32.mrb[6].mxu0  ;;  %3619 = vmatpush3.bf16.msra.mxu0 %v3923_v46  ;;  %v4399_v34 = vpop.f32.mrb[6].mxu1  ;;  %3639 = vmatpush3.bf16.msra.mxu1 %v3924_v49  ;;  %v3958_v46 = vld [vmem:[#allocation5 + $0x560] sm:$0xff]   ;;  %v3959_v49 = vld [vmem:[#allocation5 + $0x528] sm:$0xff]  }
 0x13e   :  { %v3347_v53 = vpop.f32.mrb[7].mxu0  ;;  %3620 = vmatprep.subr.bf16.mxu0 %v4077_v0  ;;  %v3367_v55 = vpop.f32.mrb[7].mxu1  ;;  %3640 = vmatprep.subr.bf16.mxu1 %v4077_v0  ;;  %v3960_v15 = vld [vmem:[#allocation5 + $0x568] sm:$0xff]  }
 0x141   :  { %3621 = vmatpush3.bf16.msra.mxu0 %v3925_v33  ;;  %3641 = vmatpush3.bf16.msra.mxu1 %v3926_v54 }
 0x142   :  { %3622 = vmatprep.subr.bf16.mxu0 %v4077_v0  ;;  %3642 = vmatprep.subr.bf16.mxu1 %v4077_v0 }
 0x145   :  { %3623 = vmatpush3.bf16.msra.mxu0 %v3927_v56  ;;  %3643 = vmatpush3.bf16.msra.mxu1 %v3928_v59  ;;  %v3961_v56 = vld [vmem:[#allocation5 + $0x530] sm:$0xff]  }
 0x146   :  { %3648 = vmatprep.subr.bf16.mxu0 %v4077_v0  ;;  %3668 = vmatprep.subr.bf16.mxu1 %v4077_v0 }
 0x148   :  { %3625 = vmatmul.mubr.bf16.vlgmr.msra.gmra.mrb[32].mxu0 %v3000_v1  ;;  %3645 = vmatmul.mubr.bf16.vlgmr.msra.gmra.mrb[32].mxu1 %v3009_v51  ;;  %v3993_v51 = vld [vmem:[#allocation2 + $0x60] sm:$0xf] }
 0x149   :  { %3649 = vmatpush3.bf16.msra.mxu0 %v3931_v52  ;;  %3669 = vmatpush3.bf16.msra.mxu1 %v3932_v2  ;;  %v3994_v52 = vld [vmem:[#allocation2 + $0x64] sm:$0xf] }
 0x14a   :  { %3650 = vmatprep.subr.bf16.mxu0 %v4077_v0  ;;  %3670 = vmatprep.subr.bf16.mxu1 %v4077_v0  ;;  %v3036_v2 = vcombine.low %v3993_v51, %v3994_v52 }
 0x14b   :  { %3664 = vmatprep.mubr.msk.bf16.mxu0 %vm4078_vm0, %v4077_v0  ;;  %3684 = vmatprep.mubr.msk.bf16.mxu1 %vm4078_vm0, %v4077_v0 }
 0x14d   :  { %3651 = vmatpush3.bf16.msra.mxu0 %v3933_v3  ;;  %3671 = vmatpush3.bf16.msra.mxu1 %v3934_v4  ;;  %v3995_v3 = vld [vmem:[#allocation2 + $0x68] sm:$0xf]  ;;  %v3996_v4 = vld [vmem:[#allocation2 + $0x6c] sm:$0xf] }
 0x14e   :  { %3652 = vmatprep.subr.bf16.mxu0 %v4077_v0  ;;  %3672 = vmatprep.subr.bf16.mxu1 %v4077_v0 }
 0x151   :  { %3653 = vmatpush3.bf16.msra.mxu0 %v3935_v5  ;;  %3673 = vmatpush3.bf16.msra.mxu1 %v3936_v6  ;;  %v3045_v5 = vcombine.low %v3995_v3, %v3996_v4  ;;  %v3967_v6 = vld [vmem:[#allocation5 + $0x580] sm:$0xff]  }
 0x152   :  { %3654 = vmatprep.subr.bf16.mxu0 %v4077_v0  ;;  %3674 = vmatprep.subr.bf16.mxu1 %v4077_v0 }
 0x155   :  { %3655 = vmatpush3.bf16.msra.mxu0 %v3937_v7  ;;  %3675 = vmatpush3.bf16.msra.mxu1 %v3938_v8  ;;  %v3968_v7 = vld [vmem:[#allocation5 + $0x5c0] sm:$0xff]   ;;  %v3969_v8 = vld [vmem:[#allocation5 + $0x588] sm:$0xff]  }
 0x156   :  { %3656 = vmatprep.subr.bf16.mxu0 %v4077_v0  ;;  %3676 = vmatprep.subr.bf16.mxu1 %v4077_v0 }
 0x159   :  { %3657 = vmatpush3.bf16.msra.mxu0 %v3939_v9  ;;  %3677 = vmatpush3.bf16.msra.mxu1 %v3940_v10  ;;  %v3970_v9 = vld [vmem:[#allocation5 + $0x5c8] sm:$0xff]   ;;  %v3971_v10 = vld [vmem:[#allocation5 + $0x590] sm:$0xff]  }
 0x15a   :  { %3658 = vmatprep.subr.bf16.mxu0 %v4077_v0  ;;  %3678 = vmatprep.subr.bf16.mxu1 %v4077_v0 }
 0x15b   :  { %v4420_v13 = vpop.f32.mrb[8].mxu0  ;;  %v4423_v17 = vpop.f32.mrb[8].mxu1 }
 0x15c   :  { %v3386_v18 = vpop.f32.mrb[9].mxu0  ;;  %v3406_v24 = vpop.f32.mrb[9].mxu1 }
 0x15d   :  { %v4425_v25 = vpop.f32.mrb[10].mxu0  ;;  %3659 = vmatpush3.bf16.msra.mxu0 %v3941_v11  ;;  %v4427_v41 = vpop.f32.mrb[10].mxu1  ;;  %3679 = vmatpush3.bf16.msra.mxu1 %v3942_v12  ;;  %v3972_v11 = vld [vmem:[#allocation5 + $0x5d0] sm:$0xff]   ;;  %v3973_v12 = vld [vmem:[#allocation5 + $0x598] sm:$0xff]   ;;  %v3975_v24 = vld [vmem:[#allocation5 + $0x5a0] sm:$0xff]  }
 0x15e   :  { %v3387_v16 = vpop.f32.mrb[11].mxu0  ;;  %3660 = vmatprep.subr.bf16.mxu0 %v4077_v0  ;;  %v3407_v28 = vpop.f32.mrb[11].mxu1  ;;  %3680 = vmatprep.subr.bf16.mxu1 %v4077_v0  ;;  %v3974_v18 = vld [vmem:[#allocation5 + $0x5d8] sm:$0xff]  }
 0x15f   :  { %v3977_v16 = vld [vmem:[#allocation5 + $0x5a8] sm:$0xff]  }
 0x161   :  { %3661 = vmatpush3.bf16.msra.mxu0 %v3943_v40  ;;  %3681 = vmatpush3.bf16.msra.mxu1 %v3944_v23  ;;  %v3976_v40 = vld [vmem:[#allocation5 + $0x5e0] sm:$0xff]   ;;  %v3978_v23 = vld [vmem:[#allocation5 + $0x5e8] sm:$0xff]  }
 0x162   :  { %3662 = vmatprep.subr.bf16.mxu0 %v4077_v0  ;;  %3682 = vmatprep.subr.bf16.mxu1 %v4077_v0 }
 0x165   :  { %3663 = vmatpush3.bf16.msra.mxu0 %v3945_v29  ;;  %3683 = vmatpush3.bf16.msra.mxu1 %v3946_v31 }
 0x166   :  { %3688 = vmatprep.subr.bf16.mxu0 %v4077_v0  ;;  %3708 = vmatprep.subr.bf16.mxu1 %v4077_v0 }
 0x168   :  { %3665 = vmatmul.mubr.bf16.vlgmr.msra.gmra.mrb[36].mxu0 %v3018_v37  ;;  %3685 = vmatmul.mubr.bf16.vlgmr.msra.gmra.mrb[36].mxu1 %v3027_v42 }
 0x169   :  { %3689 = vmatpush3.bf16.msra.mxu0 %v3949_v43  ;;  %3709 = vmatpush3.bf16.msra.mxu1 %v3950_v44 }
 0x16a   :  { %3690 = vmatprep.subr.bf16.mxu0 %v4077_v0  ;;  %3710 = vmatprep.subr.bf16.mxu1 %v4077_v0 }
 0x16b   :  { %3704 = vmatprep.mubr.msk.bf16.mxu0 %vm4078_vm0, %v4077_v0  ;;  %3724 = vmatprep.mubr.msk.bf16.mxu1 %vm4078_vm0, %v4077_v0 }
 0x16d   :  { %3691 = vmatpush3.bf16.msra.mxu0 %v3951_v45  ;;  %3711 = vmatpush3.bf16.msra.mxu1 %v3952_v57  ;;  %v3980_v45 = vld [vmem:[#allocation5 + $0x5f0] sm:$0xff]  }
 0x16e   :  { %3692 = vmatprep.subr.bf16.mxu0 %v4077_v0  ;;  %3712 = vmatprep.subr.bf16.mxu1 %v4077_v0 }
 0x171   :  { %3693 = vmatpush3.bf16.msra.mxu0 %v3953_v58  ;;  %3713 = vmatpush3.bf16.msra.mxu1 %v3954_v62  ;;  %v3981_v62 = vld [vmem:[#allocation5 + $0x5b8] sm:$0xff]  }
 0x172   :  { %3694 = vmatprep.subr.bf16.mxu0 %v4077_v0  ;;  %3714 = vmatprep.subr.bf16.mxu1 %v4077_v0 }
 0x175   :  { %3695 = vmatpush3.bf16.msra.mxu0 %v3955_v63  ;;  %3715 = vmatpush3.bf16.msra.mxu1 %v3956_v21  ;;  %v3982_v63 = vld [vmem:[#allocation5 + $0x5f8] sm:$0xff]   ;;  %v3997_v21 = vld [vmem:[#allocation2 + $0x70] sm:$0xf] }
 0x176   :  { %3696 = vmatprep.subr.bf16.mxu0 %v4077_v0  ;;  %3716 = vmatprep.subr.bf16.mxu1 %v4077_v0 }
 0x179   :  { %3697 = vmatpush3.bf16.msra.mxu0 %v3957_v22  ;;  %3717 = vmatpush3.bf16.msra.mxu1 %v3958_v46  ;;  %v3998_v22 = vld [vmem:[#allocation2 + $0x74] sm:$0xf] }
 0x17a   :  { %3698 = vmatprep.subr.bf16.mxu0 %v4077_v0  ;;  %3718 = vmatprep.subr.bf16.mxu1 %v4077_v0  ;;  %v3054_v46 = vcombine.low %v3997_v21, %v3998_v22 }
 0x17b   :  { %v4448_v19 = vpop.f32.mrb[12].mxu0  ;;  %v4451_v33 = vpop.f32.mrb[12].mxu1 }
 0x17c   :  { %v3426_v53 = vpop.f32.mrb[13].mxu0  ;;  %v3446_v54 = vpop.f32.mrb[13].mxu1 }
 0x17d   :  { %v4453_v55 = vpop.f32.mrb[14].mxu0  ;;  %3699 = vmatpush3.bf16.msra.mxu0 %v3959_v49  ;;  %v4455_v59 = vpop.f32.mrb[14].mxu1  ;;  %3719 = vmatpush3.bf16.msra.mxu1 %v3960_v15  ;;  %v3999_v49 = vld [vmem:[#allocation2 + $0x78] sm:$0xf]  ;;  %v4000_v15 = vld [vmem:[#allocation2 + $0x7c] sm:$0xf] }
 0x17e   :  { %v3427_v60 = vpop.f32.mrb[15].mxu0  ;;  %3700 = vmatprep.subr.bf16.mxu0 %v4077_v0  ;;  %v3447_v1 = vpop.f32.mrb[15].mxu1  ;;  %3720 = vmatprep.subr.bf16.mxu1 %v4077_v0  ;;  %v3063_v53 = vcombine.low %v3999_v49, %v4000_v15 }
 0x181   :  { %3701 = vmatpush3.bf16.msra.mxu0 %v3961_v56  ;;  %3721 = vmatpush3.bf16.msra.mxu1 %v3962_v61 }
 0x182   :  { %3702 = vmatprep.subr.bf16.mxu0 %v4077_v0  ;;  %3722 = vmatprep.subr.bf16.mxu1 %v4077_v0 }
 0x185   :  { %3703 = vmatpush3.bf16.msra.mxu0 %v3963_v47  ;;  %3723 = vmatpush3.bf16.msra.mxu1 %v3964_v48 }
 0x186   :  { %3728 = vmatprep.subr.bf16.mxu0 %v4077_v0  ;;  %3748 = vmatprep.subr.bf16.mxu1 %v4077_v0 }
 0x188   :  { %3705 = vmatmul.mubr.bf16.vlgmr.msra.gmra.mrb[40].mxu0 %v3036_v2  ;;  %3725 = vmatmul.mubr.bf16.vlgmr.msra.gmra.mrb[40].mxu1 %v3045_v5 }
 0x189   :  { %3729 = vmatpush3.bf16.msra.mxu0 %v3967_v6  ;;  %3749 = vmatpush3.bf16.msra.mxu1 %v3968_v7 }
 0x18a   :  { %3730 = vmatprep.subr.bf16.mxu0 %v4077_v0  ;;  %3750 = vmatprep.subr.bf16.mxu1 %v4077_v0 }
 0x18b   :  { %3744 = vmatprep.mubr.msk.bf16.mxu0 %vm4078_vm0, %v4077_v0  ;;  %3764 = vmatprep.mubr.msk.bf16.mxu1 %vm4078_vm0, %v4077_v0 }
 0x18d   :  { %3731 = vmatpush3.bf16.msra.mxu0 %v3969_v8  ;;  %3751 = vmatpush3.bf16.msra.mxu1 %v3970_v9 }
 0x18e   :  { %3732 = vmatprep.subr.bf16.mxu0 %v4077_v0  ;;  %3752 = vmatprep.subr.bf16.mxu1 %v4077_v0 }
 0x191   :  { %3733 = vmatpush3.bf16.msra.mxu0 %v3971_v10  ;;  %3753 = vmatpush3.bf16.msra.mxu1 %v3972_v11 }
 0x192   :  { %3734 = vmatprep.subr.bf16.mxu0 %v4077_v0  ;;  %3754 = vmatprep.subr.bf16.mxu1 %v4077_v0 }
 0x195   :  { %3735 = vmatpush3.bf16.msra.mxu0 %v3973_v12  ;;  %3755 = vmatpush3.bf16.msra.mxu1 %v3974_v18 }
 0x196   :  { %3736 = vmatprep.subr.bf16.mxu0 %v4077_v0  ;;  %3756 = vmatprep.subr.bf16.mxu1 %v4077_v0 }
 0x199   :  { %3737 = vmatpush3.bf16.msra.mxu0 %v3975_v24  ;;  %3757 = vmatpush3.bf16.msra.mxu1 %v3976_v40 }
 0x19a   :  { %3738 = vmatprep.subr.bf16.mxu0 %v4077_v0  ;;  %3758 = vmatprep.subr.bf16.mxu1 %v4077_v0 }
 0x19b   :  { %v1336_v28 = vpop.f32.mrb[16].mxu0  ;;  %v1431_v31 = vpop.f32.mrb[16].mxu1 }
 0x19c   :  { %v2801_v29 = vadd.f32 %v1336_v28, %v4358_v26  ;;  %v3466_v35 = vpop.f32.mrb[17].mxu0  ;;  %v2803_v36 = vadd.f32 %v1431_v31, %v4361_v27  ;;  %v3486_v37 = vpop.f32.mrb[17].mxu1 }
 0x19d   :  { %v1339_v38 = vpop.f32.mrb[18].mxu0  ;;  %3739 = vmatpush3.bf16.msra.mxu0 %v3977_v16  ;;  %v1434_v43 = vpop.f32.mrb[18].mxu1  ;;  %3759 = vmatpush3.bf16.msra.mxu1 %v3978_v23 }
 0x19e   :  { %2818 = vst [vmem:[#allocation7 + $0x80] sm:$0xff] %v2801_v29  ;;  %v2802_v42 = vadd.f32 %v1339_v38, %v4363_v30  ;;  %v3467_v44 = vpop.f32.mrb[19].mxu0  ;;  %3740 = vmatprep.subr.bf16.mxu0 %v4077_v0  ;;  %2820 = vst [vmem:[#allocation7 + $0x90] sm:$0xff] %v2803_v36  ;;  %v2804_v57 = vadd.f32 %v1434_v43, %v4365_v32  ;;  %v3487_v58 = vpop.f32.mrb[19].mxu1  ;;  %3760 = vmatprep.subr.bf16.mxu1 %v4077_v0 }
 0x1a0   :  { %2819 = vst [vmem:[#allocation7 + $0x88] sm:$0xff] %v2802_v42  ;;  %2821 = vst [vmem:[#allocation7 + $0x98] sm:$0xff] %v2804_v57 }
 0x1a1   :  { %3741 = vmatpush3.bf16.msra.mxu0 %v3979_v39  ;;  %3761 = vmatpush3.bf16.msra.mxu1 %v3980_v45 }
 0x1a2   :  { %3742 = vmatprep.subr.bf16.mxu0 %v4077_v0  ;;  %3762 = vmatprep.subr.bf16.mxu1 %v4077_v0 }
 0x1a5   :  { %3743 = vmatpush3.bf16.msra.mxu0 %v3981_v62  ;;  %3763 = vmatpush3.bf16.msra.mxu1 %v3982_v63 }
 0x1a8   :  { %3745 = vmatmul.mubr.bf16.vlgmr.msra.gmra.mrb[44].mxu0 %v3054_v46  ;;  %3765 = vmatmul.mubr.bf16.vlgmr.msra.gmra.mrb[44].mxu1 %v3063_v53 }
 0x1bb   :  { %v1526_v54 = vpop.f32.mrb[20].mxu0  ;;  %v1621_v60 = vpop.f32.mrb[20].mxu1 }
 0x1bc   :  { %v2805_v56 = vadd.f32 %v1526_v54, %v4392_v50  ;;  %v3506_v61 = vpop.f32.mrb[21].mxu0  ;;  %v2807_v1 = vadd.f32 %v1621_v60, %v4395_v14  ;;  %v3526_v47 = vpop.f32.mrb[21].mxu1 }
 0x1bd   :  { %v1529_v48 = vpop.f32.mrb[22].mxu0  ;;  %v1624_v51 = vpop.f32.mrb[22].mxu1 }
 0x1be   :  { %2822 = vst [vmem:[#allocation7 + $0xa0] sm:$0xff] %v2805_v56  ;;  %v2806_v0 = vadd.f32 %v1529_v48, %v4397_v20  ;;  %v3507_v52 = vpop.f32.mrb[23].mxu0  ;;  %2824 = vst [vmem:[#allocation7 + $0xb0] sm:$0xff] %v2807_v1  ;;  %v2808_v2 = vadd.f32 %v1624_v51, %v4399_v34  ;;  %v3527_v3 = vpop.f32.mrb[23].mxu1 }
 0x1c0   :  { %2823 = vst [vmem:[#allocation7 + $0xa8] sm:$0xff] %v2806_v0  ;;  %2825 = vst [vmem:[#allocation7 + $0xb8] sm:$0xff] %v2808_v2 }
 0x1db   :  { %v1716_v4 = vpop.f32.mrb[24].mxu0  ;;  %v1811_v6 = vpop.f32.mrb[24].mxu1 }
 0x1dc   :  { %v2809_v5 = vadd.f32 %v1716_v4, %v4420_v13  ;;  %v3546_v7 = vpop.f32.mrb[25].mxu0  ;;  %v2811_v8 = vadd.f32 %v1811_v6, %v4423_v17  ;;  %v3566_v9 = vpop.f32.mrb[25].mxu1 }
 0x1dd   :  { %v1719_v10 = vpop.f32.mrb[26].mxu0  ;;  %v1814_v12 = vpop.f32.mrb[26].mxu1 }
 0x1de   :  { %2826 = vst [vmem:[#allocation7 + $0xc0] sm:$0xff] %v2809_v5  ;;  %v2810_v11 = vadd.f32 %v1719_v10, %v4425_v25  ;;  %v3547_v18 = vpop.f32.mrb[27].mxu0  ;;  %2828 = vst [vmem:[#allocation7 + $0xd0] sm:$0xff] %v2811_v8  ;;  %v2812_v24 = vadd.f32 %v1814_v12, %v4427_v41  ;;  %v3567_v40 = vpop.f32.mrb[27].mxu1 }
 0x1e0   :  { %2827 = vst [vmem:[#allocation7 + $0xc8] sm:$0xff] %v2810_v11  ;;  %2829 = vst [vmem:[#allocation7 + $0xd8] sm:$0xff] %v2812_v24 }
 0x1fb   :  { %v1906_v16 = vpop.f32.mrb[28].mxu0  ;;  %v2001_v28 = vpop.f32.mrb[28].mxu1 }
 0x1fc   :  { %v2813_v23 = vadd.f32 %v1906_v16, %v4448_v19  ;;  %v3586_v29 = vpop.f32.mrb[29].mxu0  ;;  %v2815_v31 = vadd.f32 %v2001_v28, %v4451_v33  ;;  %v3606_v35 = vpop.f32.mrb[29].mxu1 }
 0x1fd   :  { %v1909_v36 = vpop.f32.mrb[30].mxu0  ;;  %v2004_v38 = vpop.f32.mrb[30].mxu1 }
 0x1fe   :  { %2830 = vst [vmem:[#allocation7 + $0xe0] sm:$0xff] %v2813_v23  ;;  %v2814_v37 = vadd.f32 %v1909_v36, %v4453_v55  ;;  %v3587_v39 = vpop.f32.mrb[31].mxu0  ;;  %2832 = vst [vmem:[#allocation7 + $0xf0] sm:$0xff] %v2815_v31  ;;  %v2816_v42 = vadd.f32 %v2004_v38, %v4455_v59  ;;  %v3607_v43 = vpop.f32.mrb[31].mxu1 }
 0x200   :  { %2831 = vst [vmem:[#allocation7 + $0xe8] sm:$0xff] %v2814_v37  ;;  %2833 = vst [vmem:[#allocation7 + $0xf8] sm:$0xff] %v2816_v42 }
 0x21b   :  { %v2096_v44 = vpop.f32.mrb[32].mxu0  ;;  %v2191_v57 = vpop.f32.mrb[32].mxu1 }
 0x21c   :  { %v2768_v45 = vsub.f32 %v4358_v26, %v2096_v44  ;;  %v3626_v58 = vpop.f32.mrb[33].mxu0  ;;  %v2770_v62 = vsub.f32 %v4361_v27, %v2191_v57  ;;  %v3646_v63 = vpop.f32.mrb[33].mxu1 }
 0x21d   :  { %v2099_v21 = vpop.f32.mrb[34].mxu0  ;;  %v2194_v46 = vpop.f32.mrb[34].mxu1 }
 0x21e   :  { %2785 = vst [vmem:[#allocation7] sm:$0xff] %v2768_v45  ;;  %v2769_v22 = vsub.f32 %v4363_v30, %v2099_v21  ;;  %v3627_v49 = vpop.f32.mrb[35].mxu0  ;;  %2787 = vst [vmem:[#allocation7 + $0x10] sm:$0xff] %v2770_v62  ;;  %v2771_v15 = vsub.f32 %v4365_v32, %v2194_v46  ;;  %v3647_v53 = vpop.f32.mrb[35].mxu1 }
 0x220   :  { %2786 = vst [vmem:[#allocation7 + $0x8] sm:$0xff] %v2769_v22  ;;  %2788 = vst [vmem:[#allocation7 + $0x18] sm:$0xff] %v2771_v15 }
 0x23b   :  { %v2286_v54 = vpop.f32.mrb[36].mxu0  ;;  %v2381_v56 = vpop.f32.mrb[36].mxu1 }
 0x23c   :  { %v2772_v26 = vsub.f32 %v4392_v50, %v2286_v54  ;;  %v3666_v60 = vpop.f32.mrb[37].mxu0  ;;  %v2774_v27 = vsub.f32 %v4395_v14, %v2381_v56  ;;  %v3686_v61 = vpop.f32.mrb[37].mxu1 }
 0x23d   :  { %v2289_v1 = vpop.f32.mrb[38].mxu0  ;;  %v2384_v47 = vpop.f32.mrb[38].mxu1 }
 0x23e   :  { %2789 = vst [vmem:[#allocation7 + $0x20] sm:$0xff] %v2772_v26  ;;  %v2773_v30 = vsub.f32 %v4397_v20, %v2289_v1  ;;  %v3667_v48 = vpop.f32.mrb[39].mxu0  ;;  %2791 = vst [vmem:[#allocation7 + $0x30] sm:$0xff] %v2774_v27  ;;  %v2775_v32 = vsub.f32 %v4399_v34, %v2384_v47  ;;  %v3687_v0 = vpop.f32.mrb[39].mxu1 }
 0x240   :  { %2790 = vst [vmem:[#allocation7 + $0x28] sm:$0xff] %v2773_v30  ;;  %2792 = vst [vmem:[#allocation7 + $0x38] sm:$0xff] %v2775_v32 }
 0x25b   :  { %v2476_v51 = vpop.f32.mrb[40].mxu0  ;;  %v2571_v52 = vpop.f32.mrb[40].mxu1 }
 0x25c   :  { %v2776_v50 = vsub.f32 %v4420_v13, %v2476_v51  ;;  %v3706_v2 = vpop.f32.mrb[41].mxu0  ;;  %v2778_v14 = vsub.f32 %v4423_v17, %v2571_v52  ;;  %v3726_v3 = vpop.f32.mrb[41].mxu1 }
 0x25d   :  { %v2479_v4 = vpop.f32.mrb[42].mxu0  ;;  %v2574_v5 = vpop.f32.mrb[42].mxu1 }
 0x25e   :  { %2793 = vst [vmem:[#allocation7 + $0x40] sm:$0xff] %v2776_v50  ;;  %v2777_v20 = vsub.f32 %v4425_v25, %v2479_v4  ;;  %v3707_v6 = vpop.f32.mrb[43].mxu0  ;;  %2795 = vst [vmem:[#allocation7 + $0x50] sm:$0xff] %v2778_v14  ;;  %v2779_v34 = vsub.f32 %v4427_v41, %v2574_v5  ;;  %v3727_v7 = vpop.f32.mrb[43].mxu1 }
 0x260   :  { %2794 = vst [vmem:[#allocation7 + $0x48] sm:$0xff] %v2777_v20  ;;  %2796 = vst [vmem:[#allocation7 + $0x58] sm:$0xff] %v2779_v34 }
 0x27b   :  { %v2666_v8 = vpop.f32.mrb[44].mxu0  ;;  %v2761_v9 = vpop.f32.mrb[44].mxu1 }
 0x27c   :  { %v2780_v13 = vsub.f32 %v4448_v19, %v2666_v8  ;;  %v3746_v17 = vpop.f32.mrb[45].mxu0  ;;  %v2782_v10 = vsub.f32 %v4451_v33, %v2761_v9  ;;  %v3766_v11 = vpop.f32.mrb[45].mxu1 }
 0x27d   :  { %v2669_v12 = vpop.f32.mrb[46].mxu0  ;;  %v2764_v18 = vpop.f32.mrb[46].mxu1 }
 0x27e   :  { %2797 = vst [vmem:[#allocation7 + $0x60] sm:$0xff] %v2780_v13  ;;  %v2781_v25 = vsub.f32 %v4453_v55, %v2669_v12  ;;  %v3747_v24 = vpop.f32.mrb[47].mxu0  ;;  %2799 = vst [vmem:[#allocation7 + $0x70] sm:$0xff] %v2782_v10  ;;  %v2783_v41 = vsub.f32 %v4455_v59, %v2764_v18  ;;  %v3767_v40 = vpop.f32.mrb[47].mxu1 }
 0x280   :  { %2798 = vst [vmem:[#allocation7 + $0x68] sm:$0xff] %v2781_v25  ;;  %2800 = vst [vmem:[#allocation7 + $0x78] sm:$0xff] %v2783_v41 }
 0x281   :  { %4056 = shalt.err (!%p4053_p6)
}
 0x282   :  { %s4057_s10 = scalar_lea.hbm %s4527_s2, 4096 }
 0x283   :  { %p4058_p7 = scmp.ne.s32.totalorder %s4527_s2, %s4057_s10  ;;  %p4061_p8 = scmp.lt.u32.totalorder %s4057_s10, %s4527_s2 }
 0x285   :  { %p4063_p9 = pnand %p4061_p8, %p4058_p7 }
 0x287   :  { %4066 = shalt.err (!%p4063_p9)
}
 0x288   :  { %s4080_s15 = smov 128   ;;  %s4081_s16 = smov 8  }
 0x289   :  { %2845 = dma.vmem_to_hbm [thread:$0]  %s2840_s6, 4096, %s4527_s2, [#allocation4], %s4080_s15, %s4080_s15, %s4081_s16  }
 0x28a   :  { %4071 = dma.done.wait [#allocation4], 4096  }
 0x28b   :  { %4072 = vsyncadd [#allocation4], 4294963200 }
 0x28c   :  { %2849 = vsyncpa [#allocation3], 1 }
 0x28d   :  { %2850 = vsyncpa [#allocation6], 1 }
 0x28e   :  { %2851 = vsyncpa [#allocation4], 1 }

</bundles_post_ra>
